<compile_context>
chip_gen: v6e
topology: v6e:2x2x1
jax: 0.10.0
libtpu: 0.0.40
codegen_flags: <defaults>
</compile_context>

<pallas_src>
import functools

import jax
import jax.numpy as jnp
from jax import lax
from jax.experimental import pallas as pl
from jax.experimental.pallas import tpu as pltpu

_LN_EPS = 1e-5


@functools.lru_cache(maxsize=None)
def _vmem_limit_bytes():
    """Generation-aware scoped-VMEM limit: ~3/4 of physical VMEM, with headroom.

    ~96 MiB on 128 MiB chips (v5e/v6e), ~48 MiB on v7x (64 MiB physical).
    """
    default = 48 * 1024 * 1024  # safe everywhere (below v7x physical VMEM)
    try:
        cap = int(pltpu.get_tpu_info().vmem_capacity_bytes)
    except Exception:
        return default
    lim = min((cap * 3) // 4, cap - (8 << 20))
    return lim if lim > 0 else default


def _choose_token_tile(n):
    """Largest grid-friendly token tile (bigger tiles on the 128 MiB-VMEM chips)."""
    max_tile = 512 if _vmem_limit_bytes() >= (80 << 20) else 256
    for t in (512, 256, 128):
        if t <= max_tile and n % t == 0:
            return t
    return n  # small or irregular N -> single block along tokens


def _head_group(num_heads, head_dim):
    """Smallest head group G (dividing num_heads) with lane-dense width G*head_dim."""
    for g in range(1, num_heads + 1):
        if num_heads % g == 0 and (g * head_dim) % 128 == 0:
            return g
    return num_heads  # fallback: all heads of a batch element in one grid step


def _layernorm(x, gamma, beta):
    mu = jnp.mean(x, axis=-1, keepdims=True)
    d = x - mu
    var = jnp.mean(d * d, axis=-1, keepdims=True)
    return d * lax.rsqrt(var + _LN_EPS) * gamma + beta


# ----------------------- kernel A: pos-add + LayerNorm1 + QKV projection ----------------
def _ln_qkv_kernel(x_ref, pos_ref, g1_ref, b1_ref, wqkv_ref, y_ref, qkv_ref):
    y = x_ref[...] + pos_ref[...]                        # (TN, C) f32 residual stream
    y_ref[...] = y
    h = _layernorm(y, g1_ref[...], b1_ref[...])
    qkv = jnp.dot(h.astype(jnp.bfloat16), wqkv_ref[...],
                  preferred_element_type=jnp.float32)    # (TN, 3C), f32 accumulation
    qkv_ref[...] = qkv.astype(qkv_ref.dtype)


# ----------------------- kernel B: attention core over a lane-dense head group ----------
def _attn_core_kernel(q_ref, k_ref, v_ref, o_ref, *, group, head_dim):
    # Refs are (N, group*head_dim) column slabs of the (B, N, 3C) qkv buffer; the head
    # split is a static lane slice in-kernel (no HBM-level transpose anywhere).
    # q is already scaled (scale folded into the q columns of Wqkv in the wrapper).
    outs = []
    for gi in range(group):                              # static, small (<= 4 typically)
        lo = gi * head_dim
        q = q_ref[:, lo:lo + head_dim]                   # (N, hd) bf16
        k = k_ref[:, lo:lo + head_dim]
        v = v_ref[:, lo:lo + head_dim]
        s = lax.dot_general(q, k, (((1,), (1,)), ((), ())),
                            preferred_element_type=jnp.float32)      # (N, N)
        s = s - jnp.max(s, axis=-1, keepdims=True)
        p = jnp.exp(s)
        p = p * pl.reciprocal(jnp.sum(p, axis=-1, keepdims=True), approx=True)
        o = jnp.dot(p.astype(jnp.bfloat16), v,
                    preferred_element_type=jnp.float32)              # (N, hd)
        outs.append(o.astype(o_ref.dtype))
    o_ref[...] = jnp.concatenate(outs, axis=-1)          # (N, group*hd) lane-dense store


# ----------------------- kernel C: proj + residual + LayerNorm2 + MLP -------------------
def _proj_mlp_kernel(ao_ref, y_ref, wproj_ref, bproj_ref, g2_ref, b2_ref,
                     wfc1_ref, bfc1_ref, wfc2_ref, bfc2_ref, o_ref):
    z = jnp.dot(ao_ref[...], wproj_ref[...],
                preferred_element_type=jnp.float32) + bproj_ref[...]
    y2 = y_ref[...] + z                                   # residual 1
    h = _layernorm(y2, g2_ref[...], b2_ref[...])
    m = jnp.dot(h.astype(jnp.bfloat16), wfc1_ref[...],
                preferred_element_type=jnp.float32) + bfc1_ref[...]
    # TODO(synk): PyTorch nn.GELU defaults to the exact erf form; the tanh approximation
    # is used in-kernel (max abs deviation ~3e-3) since erf has no guaranteed lowering.
    m = jax.nn.gelu(m, approximate=True)
    m2 = jnp.dot(m.astype(jnp.bfloat16), wfc2_ref[...],
                 preferred_element_type=jnp.float32) + bfc2_ref[...]
    o_ref[...] = (y2 + m2).astype(o_ref.dtype)            # residual 2


def _block_forward(x, pos, p, *, num_heads):
    B, N, C = x.shape
    hd = C // num_heads
    hidden = p["w_fc1"].shape[1]
    tn = _choose_token_tile(N)
    G = _head_group(num_heads, hd)
    n_groups = num_heads // G
    gw = G * hd

    cparams = pltpu.CompilerParams(
        dimension_semantics=("parallel", "parallel"),
        vmem_limit_bytes=_vmem_limit_bytes())

    tok_spec = pl.BlockSpec((None, tn, C), lambda b, n: (b, n, 0))
    # pos may be (B, N, C) or a broadcastable (1, N, C) positional embedding.
    pos_spec = pl.BlockSpec(
        (None, tn, C),
        (lambda b, n: (b, n, 0)) if pos.shape[0] == B else (lambda b, n: (0, n, 0)))
    row_spec = lambda d: pl.BlockSpec((1, d), lambda b, n: (0, 0))

    # ---- kernel A: y = x + pos ; qkv = LN1(y) @ Wqkv (q columns pre-scaled) ----
    y, qkv = pl.pallas_call(
        _ln_qkv_kernel,
        out_shape=(jax.ShapeDtypeStruct((B, N, C), jnp.float32),
                   jax.ShapeDtypeStruct((B, N, 3 * C), jnp.bfloat16)),
        grid=(B, N // tn),
        in_specs=[
            tok_spec,                                              # x
            pos_spec,                                              # pos
            row_spec(C), row_spec(C),                              # LN1 gamma / beta
            pl.BlockSpec((C, 3 * C), lambda b, n: (0, 0)),         # Wqkv (bf16, q scaled)
        ],
        out_specs=(tok_spec,
                   pl.BlockSpec((None, tn, 3 * C), lambda b, n: (b, n, 0))),
        compiler_params=cparams,
    )(x, pos, p["g1"], p["b1"], p["w_qkv"])

    # ---- kernel B: reads q/k/v column slabs straight out of the (B, N, 3C) qkv buffer
    # and writes head-group outputs straight into a lane-dense (B, N, C) buffer.
    # No XLA reshape/transpose round-trips between kernels.
    q_spec = pl.BlockSpec((None, N, gw), lambda b, g: (b, 0, g))
    k_spec = pl.BlockSpec((None, N, gw), lambda b, g: (b, 0, n_groups + g))
    v_spec = pl.BlockSpec((None, N, gw), lambda b, g: (b, 0, 2 * n_groups + g))
    o_spec = pl.BlockSpec((None, N, gw), lambda b, g: (b, 0, g))
    ao = pl.pallas_call(
        functools.partial(_attn_core_kernel, group=G, head_dim=hd),
        out_shape=jax.ShapeDtypeStruct((B, N, C), jnp.bfloat16),
        grid=(B, n_groups),
        in_specs=[q_spec, k_spec, v_spec],
        out_specs=o_spec,
        compiler_params=cparams,
    )(qkv, qkv, qkv)

    # ---- kernel C: proj + residual + LN2 + MLP + residual ----
    out = pl.pallas_call(
        _proj_mlp_kernel,
        out_shape=jax.ShapeDtypeStruct((B, N, C), jnp.float32),
        grid=(B, N // tn),
        in_specs=[
            tok_spec,                                              # attention output (bf16)
            tok_spec,                                              # residual stream y (f32)
            pl.BlockSpec((C, C), lambda b, n: (0, 0)),             # Wproj
            row_spec(C),                                           # bproj
            row_spec(C), row_spec(C),                              # LN2 gamma / beta
            pl.BlockSpec((C, hidden), lambda b, n: (0, 0)),        # Wfc1
            row_spec(hidden),                                      # bfc1
            pl.BlockSpec((hidden, C), lambda b, n: (0, 0)),        # Wfc2
            row_spec(C),                                           # bfc2
        ],
        out_specs=tok_spec,
        compiler_params=cparams,
    )(ao, y, p["w_proj"], p["b_proj"], p["g2"], p["b2"],
      p["w_fc1"], p["b_fc1"], p["w_fc2"], p["b_fc2"])
    return out


def _prepare_block_params(raw, *, num_heads, qk_scale=None):
    """Cast / reshape one block's params for the kernels.

    Linear weights are stored as (in_features, out_features) (transposed w.r.t.
    torch's nn.Linear.weight) so y = x @ W + b.  The attention scale is folded
    into the q columns of Wqkv here (wrapper-side, once).
    """
    C = raw["w_qkv"].shape[0]
    hd = C // num_heads
    scale = qk_scale if qk_scale is not None else hd ** (-0.5)
    w_qkv = jnp.concatenate(
        [raw["w_qkv"][:, :C] * scale, raw["w_qkv"][:, C:]], axis=1)
    return dict(
        g1=raw["g1"].reshape(1, C).astype(jnp.float32),
        b1=raw["b1"].reshape(1, C).astype(jnp.float32),
        w_qkv=w_qkv.astype(jnp.bfloat16),
        w_proj=raw["w_proj"].astype(jnp.bfloat16),
        b_proj=raw["b_proj"].reshape(1, C).astype(jnp.float32),
        g2=raw["g2"].reshape(1, C).astype(jnp.float32),
        b2=raw["b2"].reshape(1, C).astype(jnp.float32),
        w_fc1=raw["w_fc1"].astype(jnp.bfloat16),
        b_fc1=raw["b_fc1"].reshape(1, -1).astype(jnp.float32),
        w_fc2=raw["w_fc2"].astype(jnp.bfloat16),
        b_fc2=raw["b_fc2"].reshape(1, C).astype(jnp.float32),
    )


def transformer_encoder_pallas(x, pos, blocks, *, num_heads, qk_scale=None):
    """Forward pass of TransformerEncoder: for each block, x = Block(x + pos)."""
    x = x.astype(jnp.float32)
    pos = pos.astype(jnp.float32)
    for raw in blocks:
        p = _prepare_block_params(raw, num_heads=num_heads, qk_scale=qk_scale)
        x = _block_forward(x, pos, p, num_heads=num_heads)
    return x


def transformer_encoder_reference(x, pos, blocks, *, num_heads, qk_scale=None):
    """Pure-JAX f32 reference reproducing the PyTorch forward (exact GELU)."""
    def ln(v, g, b):
        mu = jnp.mean(v, -1, keepdims=True)
        var = jnp.mean((v - mu) ** 2, -1, keepdims=True)
        return (v - mu) / jnp.sqrt(var + _LN_EPS) * g + b

    B, N, C = x.shape
    hd = C // num_heads
    scale = qk_scale if qk_scale is not None else hd ** (-0.5)
    for p in blocks:
        y = x + pos
        h = ln(y, p["g1"], p["b1"])
        qkv = h @ p["w_qkv"]
        qkv = qkv.reshape(B, N, 3, num_heads, hd).transpose(2, 0, 3, 1, 4)
        q, k, v = qkv[0], qkv[1], qkv[2]
        attn = jnp.einsum("bhnd,bhmd->bhnm", q, k) * scale
        attn = jax.nn.softmax(attn, axis=-1)
        o = jnp.einsum("bhnm,bhmd->bhnd", attn, v)
        o = o.transpose(0, 2, 1, 3).reshape(B, N, C)
        y2 = y + (o @ p["w_proj"] + p["b_proj"])
        h2 = ln(y2, p["g2"], p["b2"])
        m = jax.nn.gelu(h2 @ p["w_fc1"] + p["b_fc1"], approximate=False)
        x = y2 + (m @ p["w_fc2"] + p["b_fc2"])
    return x


if __name__ == "__main__":
    # Small shapes consistent with the module (embed_dim divisible by num_heads);
    # C = 128, hd = 32 -> head group of 4 keeps attention blocks lane-dense even at toy size.
    B, N, C = 2, 16, 128
    num_heads, depth, mlp_ratio = 4, 2, 4.0
    hidden = int(C * mlp_ratio)

    key = jax.random.PRNGKey(0)
    kx, kpos, kp = jax.random.split(key, 3)
    x = jax.random.normal(kx, (B, N, C), dtype=jnp.float32)
    pos = 0.1 * jax.random.normal(kpos, (B, N, C), dtype=jnp.float32)

    blocks = []
    for d in range(depth):
        ks = jax.random.split(jax.random.fold_in(kp, d), 9)
        blocks.append(dict(
            g1=1.0 + 0.02 * jax.random.normal(ks[0], (C,), jnp.float32),
            b1=0.02 * jax.random.normal(ks[1], (C,), jnp.float32),
            w_qkv=0.02 * jax.random.normal(ks[2], (C, 3 * C), jnp.float32),
            w_proj=0.02 * jax.random.normal(ks[3], (C, C), jnp.float32),
            b_proj=0.02 * jax.random.normal(ks[4], (C,), jnp.float32),
            g2=1.0 + 0.02 * jax.random.normal(ks[5], (C,), jnp.float32),
            b2=0.02 * jax.random.normal(ks[6], (C,), jnp.float32),
            w_fc1=0.02 * jax.random.normal(ks[7], (C, hidden), jnp.float32),
            b_fc1=jnp.zeros((hidden,), jnp.float32),
            w_fc2=0.02 * jax.random.normal(ks[8], (hidden, C), jnp.float32),
            b_fc2=jnp.zeros((C,), jnp.float32),
        ))

    fwd = jax.jit(functools.partial(transformer_encoder_pallas, num_heads=num_heads))
    out = jax.block_until_ready(fwd(x, pos, blocks))

    ref = transformer_encoder_reference(x, pos, blocks, num_heads=num_heads)
    assert out.shape == (B, N, C)
    err = jnp.max(jnp.abs(out - ref))
    # bf16 matmuls (f32 accumulation) + tanh-GELU vs f32/erf reference.
    assert jnp.allclose(out, ref, rtol=2e-2, atol=2e-2), f"max abs diff = {err}"
    print("KERNEL_OK")
</pallas_src>

<mosaic_0001>
module attributes {stable_mosaic.version = 11 : i64} {
  func.func @_ln_qkv_kernel(%arg0: i32, %arg1: i32, %arg2: memref<1x16x128xf32, #tpu.memory_space<vmem>>, %arg3: memref<1x16x128xf32, #tpu.memory_space<vmem>>, %arg4: memref<1x128xf32, #tpu.memory_space<vmem>>, %arg5: memref<1x128xf32, #tpu.memory_space<vmem>>, %arg6: memref<128x384xbf16, #tpu.memory_space<vmem>>, %arg7: memref<1x16x128xf32, #tpu.memory_space<vmem>>, %arg8: memref<1x16x384xbf16, #tpu.memory_space<vmem>>) attributes {dimension_semantics = [#tpu.dimension_semantics<parallel>, #tpu.dimension_semantics<parallel>], iteration_bounds = array<i64: 2, 1>, scalar_prefetch = 0 : i64, scratch_operands = 0 : i64, tpu.core_type = #tpu.core_type<tc>, window_params = [{transform_indices = @transform_0, window_bounds = array<i64: 1, 16, 128>}, {transform_indices = @transform_1, window_bounds = array<i64: 1, 16, 128>}, {pipeline_mode = #tpu.pipeline_mode<synchronous>, transform_indices = @transform_2, window_bounds = array<i64: 1, 128>}, {pipeline_mode = #tpu.pipeline_mode<synchronous>, transform_indices = @transform_3, window_bounds = array<i64: 1, 128>}, {pipeline_mode = #tpu.pipeline_mode<synchronous>, transform_indices = @transform_4, window_bounds = array<i64: 128, 384>}, {transform_indices = @transform_5, window_bounds = array<i64: 1, 16, 128>}, {transform_indices = @transform_6, window_bounds = array<i64: 1, 16, 384>}]} {
    %c0 = arith.constant 0 : index
    %c0_0 = arith.constant 0 : index
    %c0_1 = arith.constant 0 : index
    %0 = vector.load %arg2[%c0, %c0_0, %c0_1] : memref<1x16x128xf32, #tpu.memory_space<vmem>>, vector<1x16x128xf32>
    %1 = vector.shape_cast %0 : vector<1x16x128xf32> to vector<16x128xf32>
    %c0_2 = arith.constant 0 : index
    %c0_3 = arith.constant 0 : index
    %c0_4 = arith.constant 0 : index
    %2 = vector.load %arg3[%c0_2, %c0_3, %c0_4] : memref<1x16x128xf32, #tpu.memory_space<vmem>>, vector<1x16x128xf32>
    %3 = vector.shape_cast %2 : vector<1x16x128xf32> to vector<16x128xf32>
    %4 = arith.addf %1, %3 : vector<16x128xf32>
    %c0_5 = arith.constant 0 : index
    %c0_6 = arith.constant 0 : index
    %c0_7 = arith.constant 0 : index
    %5 = vector.load %arg7[%c0_5, %c0_6, %c0_7] : memref<1x16x128xf32, #tpu.memory_space<vmem>>, vector<1x16x128xf32>
    %6 = vector.shape_cast %5 : vector<1x16x128xf32> to vector<16x128xf32>
    %7 = vector.shape_cast %4 : vector<16x128xf32> to vector<1x16x128xf32>
    tpu.vector_store %arg7[%c0_5, %c0_6, %c0_7], %7 {strides = array<i32>} : memref<1x16x128xf32, #tpu.memory_space<vmem>>, vector<1x16x128xf32>,
    %c0_8 = arith.constant 0 : index
    %c0_9 = arith.constant 0 : index
    %8 = vector.load %arg4[%c0_8, %c0_9] : memref<1x128xf32, #tpu.memory_space<vmem>>, vector<1x128xf32>
    %c0_10 = arith.constant 0 : index
    %c0_11 = arith.constant 0 : index
    %9 = vector.load %arg5[%c0_10, %c0_11] : memref<1x128xf32, #tpu.memory_space<vmem>>, vector<1x128xf32>
    %cst = arith.constant dense<0.000000e+00> : vector<16xf32>
    %10 = vector.multi_reduction <add>, %4, %cst [1] : vector<16x128xf32> to vector<16xf32>
    %11 = vector.shape_cast %10 : vector<16xf32> to vector<16x1xf32>
    %cst_12 = arith.constant 1.280000e+02 : f32
    %12 = vector.broadcast %cst_12 : f32 to vector<16x1xf32>
    %13 = arith.divf %11, %12 : vector<16x1xf32>
    %14 = vector.broadcast %13 : vector<16x1xf32> to vector<16x128xf32>
    %15 = arith.subf %4, %14 : vector<16x128xf32>
    %16 = arith.mulf %15, %15 : vector<16x128xf32>
    %cst_13 = arith.constant dense<0.000000e+00> : vector<16xf32>
    %17 = vector.multi_reduction <add>, %16, %cst_13 [1] : vector<16x128xf32> to vector<16xf32>
    %18 = vector.shape_cast %17 : vector<16xf32> to vector<16x1xf32>
    %cst_14 = arith.constant 1.280000e+02 : f32
    %19 = vector.broadcast %cst_14 : f32 to vector<16x1xf32>
    %20 = arith.divf %18, %19 : vector<16x1xf32>
    %cst_15 = arith.constant 9.99999974E-6 : f32
    %21 = vector.broadcast %cst_15 : f32 to vector<16x1xf32>
    %22 = arith.addf %20, %21 : vector<16x1xf32>
    %23 = math.rsqrt %22 : vector<16x1xf32>
    %24 = vector.broadcast %23 : vector<16x1xf32> to vector<16x128xf32>
    %25 = arith.mulf %15, %24 : vector<16x128xf32>
    %26 = vector.broadcast %8 : vector<1x128xf32> to vector<16x128xf32>
    %27 = arith.mulf %25, %26 : vector<16x128xf32>
    %28 = vector.broadcast %9 : vector<1x128xf32> to vector<16x128xf32>
    %29 = arith.addf %27, %28 : vector<16x128xf32>
    %30 = arith.truncf %29 : vector<16x128xf32> to vector<16x128xbf16>
    %c0_16 = arith.constant 0 : index
    %c0_17 = arith.constant 0 : index
    %31 = vector.load %arg6[%c0_16, %c0_17] : memref<128x384xbf16, #tpu.memory_space<vmem>>, vector<128x384xbf16>
    %cst_18 = arith.constant dense<0.000000e+00> : vector<16x384xf32>
    %32 = tpu.matmul %30, %31, %cst_18 {dimension_numbers = #tpu.dot_dimension_numbers<[1], [0], [0], [1], [0, 0, 1, 1], [], []>} : vector<16x128xbf16>, vector<128x384xbf16>, vector<16x384xf32> -> vector<16x384xf32>
    %33 = arith.truncf %32 : vector<16x384xf32> to vector<16x384xbf16>
    %c0_19 = arith.constant 0 : index
    %c0_20 = arith.constant 0 : index
    %c0_21 = arith.constant 0 : index
    %34 = vector.load %arg8[%c0_19, %c0_20, %c0_21] : memref<1x16x384xbf16, #tpu.memory_space<vmem>>, vector<1x16x384xbf16>
    %35 = vector.shape_cast %34 : vector<1x16x384xbf16> to vector<16x384xbf16>
    %36 = vector.shape_cast %33 : vector<16x384xbf16> to vector<1x16x384xbf16>
    tpu.vector_store %arg8[%c0_19, %c0_20, %c0_21], %36 {strides = array<i32>} : memref<1x16x384xbf16, #tpu.memory_space<vmem>>, vector<1x16x384xbf16>,
    return
  }
  func.func @transform_0(%arg0: i32, %arg1: i32) -> (i32, i32, i32) {
    %c0_i32 = arith.constant 0 : i32
    %c0_i32_0 = arith.constant 0 : i32
    return %arg0, %arg1, %c0_i32 : i32, i32, i32
  }
  func.func @transform_1(%arg0: i32, %arg1: i32) -> (i32, i32, i32) {
    %c0_i32 = arith.constant 0 : i32
    %c0_i32_0 = arith.constant 0 : i32
    return %arg0, %arg1, %c0_i32 : i32, i32, i32
  }
  func.func @transform_2(%arg0: i32, %arg1: i32) -> (i32, i32) {
    %c0_i32 = arith.constant 0 : i32
    %c0_i32_0 = arith.constant 0 : i32
    %c0_i32_1 = arith.constant 0 : i32
    return %c0_i32, %c0_i32_0 : i32, i32
  }
  func.func @transform_3(%arg0: i32, %arg1: i32) -> (i32, i32) {
    %c0_i32 = arith.constant 0 : i32
    %c0_i32_0 = arith.constant 0 : i32
    %c0_i32_1 = arith.constant 0 : i32
    return %c0_i32, %c0_i32_0 : i32, i32
  }
  func.func @transform_4(%arg0: i32, %arg1: i32) -> (i32, i32) {
    %c0_i32 = arith.constant 0 : i32
    %c0_i32_0 = arith.constant 0 : i32
    %c0_i32_1 = arith.constant 0 : i32
    return %c0_i32, %c0_i32_0 : i32, i32
  }
  func.func @transform_5(%arg0: i32, %arg1: i32) -> (i32, i32, i32) {
    %c0_i32 = arith.constant 0 : i32
    %c0_i32_0 = arith.constant 0 : i32
    return %arg0, %arg1, %c0_i32 : i32, i32, i32
  }
  func.func @transform_6(%arg0: i32, %arg1: i32) -> (i32, i32, i32) {
    %c0_i32 = arith.constant 0 : i32
    %c0_i32_0 = arith.constant 0 : i32
    return %arg0, %arg1, %c0_i32 : i32, i32, i32
  }
}

module attributes {stable_mosaic.version = 11 : i64} {
  func.func @_attn_core_kernel(%arg0: i32, %arg1: i32, %arg2: memref<1x16x128xbf16, #tpu.memory_space<vmem>>, %arg3: memref<1x16x128xbf16, #tpu.memory_space<vmem>>, %arg4: memref<1x16x128xbf16, #tpu.memory_space<vmem>>, %arg5: memref<1x16x128xbf16, #tpu.memory_space<vmem>>) attributes {dimension_semantics = [#tpu.dimension_semantics<parallel>, #tpu.dimension_semantics<parallel>], iteration_bounds = array<i64: 2, 1>, scalar_prefetch = 0 : i64, scratch_operands = 0 : i64, tpu.core_type = #tpu.core_type<tc>, window_params = [{transform_indices = @transform_0, window_bounds = array<i64: 1, 16, 128>}, {transform_indices = @transform_1, window_bounds = array<i64: 1, 16, 128>}, {transform_indices = @transform_2, window_bounds = array<i64: 1, 16, 128>}, {transform_indices = @transform_3, window_bounds = array<i64: 1, 16, 128>}]} {
    %c0 = arith.constant 0 : index
    %c0_0 = arith.constant 0 : index
    %c0_1 = arith.constant 0 : index
    %0 = vector.load %arg2[%c0, %c0_0, %c0_1] : memref<1x16x128xbf16, #tpu.memory_space<vmem>>, vector<1x16x32xbf16>
    %1 = vector.shape_cast %0 : vector<1x16x32xbf16> to vector<16x32xbf16>
    %c0_2 = arith.constant 0 : index
    %c0_3 = arith.constant 0 : index
    %c0_4 = arith.constant 0 : index
    %2 = vector.load %arg3[%c0_2, %c0_3, %c0_4] : memref<1x16x128xbf16, #tpu.memory_space<vmem>>, vector<1x16x32xbf16>
    %3 = vector.shape_cast %2 : vector<1x16x32xbf16> to vector<16x32xbf16>
    %c0_5 = arith.constant 0 : index
    %c0_6 = arith.constant 0 : index
    %c0_7 = arith.constant 0 : index
    %4 = vector.load %arg4[%c0_5, %c0_6, %c0_7] : memref<1x16x128xbf16, #tpu.memory_space<vmem>>, vector<1x16x32xbf16>
    %5 = vector.shape_cast %4 : vector<1x16x32xbf16> to vector<16x32xbf16>
    %cst = arith.constant dense<0.000000e+00> : vector<16x16xf32>
    %6 = tpu.matmul %1, %3, %cst {dimension_numbers = #tpu.dot_dimension_numbers<[1], [1], [0], [0], [0, 0, 1, 0], [], []>} : vector<16x32xbf16>, vector<16x32xbf16>, vector<16x16xf32> -> vector<16x16xf32>
    %cst_8 = arith.constant dense<0xFF800000> : vector<16xf32>
    %7 = vector.multi_reduction <maximumf>, %6, %cst_8 [1] : vector<16x16xf32> to vector<16xf32>
    %8 = vector.shape_cast %7 : vector<16xf32> to vector<16x1xf32>
    %9 = vector.broadcast %8 : vector<16x1xf32> to vector<16x16xf32>
    %10 = arith.subf %6, %9 : vector<16x16xf32>
    %11 = math.exp %10 : vector<16x16xf32>
    %cst_9 = arith.constant dense<0.000000e+00> : vector<16xf32>
    %12 = vector.multi_reduction <add>, %11, %cst_9 [1] : vector<16x16xf32> to vector<16xf32>
    %13 = vector.shape_cast %12 : vector<16xf32> to vector<16x1xf32>
    %14 = tpu.reciprocal %13 {approx = true} : vector<16x1xf32> -> vector<16x1xf32>
    %15 = vector.broadcast %14 : vector<16x1xf32> to vector<16x16xf32>
    %16 = arith.mulf %11, %15 : vector<16x16xf32>
    %17 = arith.truncf %16 : vector<16x16xf32> to vector<16x16xbf16>
    %cst_10 = arith.constant dense<0.000000e+00> : vector<16x32xf32>
    %18 = tpu.matmul %17, %5, %cst_10 {dimension_numbers = #tpu.dot_dimension_numbers<[1], [0], [0], [1], [0, 0, 1, 1], [], []>} : vector<16x16xbf16>, vector<16x32xbf16>, vector<16x32xf32> -> vector<16x32xf32>
    %19 = arith.truncf %18 : vector<16x32xf32> to vector<16x32xbf16>
    %c0_11 = arith.constant 0 : index
    %c0_12 = arith.constant 0 : index
    %c32 = arith.constant 32 : index
    %20 = vector.load %arg2[%c0_11, %c0_12, %c32] : memref<1x16x128xbf16, #tpu.memory_space<vmem>>, vector<1x16x32xbf16>
    %21 = vector.shape_cast %20 : vector<1x16x32xbf16> to vector<16x32xbf16>
    %c0_13 = arith.constant 0 : index
    %c0_14 = arith.constant 0 : index
    %c32_15 = arith.constant 32 : index
    %22 = vector.load %arg3[%c0_13, %c0_14, %c32_15] : memref<1x16x128xbf16, #tpu.memory_space<vmem>>, vector<1x16x32xbf16>
    %23 = vector.shape_cast %22 : vector<1x16x32xbf16> to vector<16x32xbf16>
    %c0_16 = arith.constant 0 : index
    %c0_17 = arith.constant 0 : index
    %c32_18 = arith.constant 32 : index
    %24 = vector.load %arg4[%c0_16, %c0_17, %c32_18] : memref<1x16x128xbf16, #tpu.memory_space<vmem>>, vector<1x16x32xbf16>
    %25 = vector.shape_cast %24 : vector<1x16x32xbf16> to vector<16x32xbf16>
    %cst_19 = arith.constant dense<0.000000e+00> : vector<16x16xf32>
    %26 = tpu.matmul %21, %23, %cst_19 {dimension_numbers = #tpu.dot_dimension_numbers<[1], [1], [0], [0], [0, 0, 1, 0], [], []>} : vector<16x32xbf16>, vector<16x32xbf16>, vector<16x16xf32> -> vector<16x16xf32>
    %cst_20 = arith.constant dense<0xFF800000> : vector<16xf32>
    %27 = vector.multi_reduction <maximumf>, %26, %cst_20 [1] : vector<16x16xf32> to vector<16xf32>
    %28 = vector.shape_cast %27 : vector<16xf32> to vector<16x1xf32>
    %29 = vector.broadcast %28 : vector<16x1xf32> to vector<16x16xf32>
    %30 = arith.subf %26, %29 : vector<16x16xf32>
    %31 = math.exp %30 : vector<16x16xf32>
    %cst_21 = arith.constant dense<0.000000e+00> : vector<16xf32>
    %32 = vector.multi_reduction <add>, %31, %cst_21 [1] : vector<16x16xf32> to vector<16xf32>
    %33 = vector.shape_cast %32 : vector<16xf32> to vector<16x1xf32>
    %34 = tpu.reciprocal %33 {approx = true} : vector<16x1xf32> -> vector<16x1xf32>
    %35 = vector.broadcast %34 : vector<16x1xf32> to vector<16x16xf32>
    %36 = arith.mulf %31, %35 : vector<16x16xf32>
    %37 = arith.truncf %36 : vector<16x16xf32> to vector<16x16xbf16>
    %cst_22 = arith.constant dense<0.000000e+00> : vector<16x32xf32>
    %38 = tpu.matmul %37, %25, %cst_22 {dimension_numbers = #tpu.dot_dimension_numbers<[1], [0], [0], [1], [0, 0, 1, 1], [], []>} : vector<16x16xbf16>, vector<16x32xbf16>, vector<16x32xf32> -> vector<16x32xf32>
    %39 = arith.truncf %38 : vector<16x32xf32> to vector<16x32xbf16>
    %c0_23 = arith.constant 0 : index
    %c0_24 = arith.constant 0 : index
    %c64 = arith.constant 64 : index
    %40 = vector.load %arg2[%c0_23, %c0_24, %c64] : memref<1x16x128xbf16, #tpu.memory_space<vmem>>, vector<1x16x32xbf16>
    %41 = vector.shape_cast %40 : vector<1x16x32xbf16> to vector<16x32xbf16>
    %c0_25 = arith.constant 0 : index
    %c0_26 = arith.constant 0 : index
    %c64_27 = arith.constant 64 : index
    %42 = vector.load %arg3[%c0_25, %c0_26, %c64_27] : memref<1x16x128xbf16, #tpu.memory_space<vmem>>, vector<1x16x32xbf16>
    %43 = vector.shape_cast %42 : vector<1x16x32xbf16> to vector<16x32xbf16>
    %c0_28 = arith.constant 0 : index
    %c0_29 = arith.constant 0 : index
    %c64_30 = arith.constant 64 : index
    %44 = vector.load %arg4[%c0_28, %c0_29, %c64_30] : memref<1x16x128xbf16, #tpu.memory_space<vmem>>, vector<1x16x32xbf16>
    %45 = vector.shape_cast %44 : vector<1x16x32xbf16> to vector<16x32xbf16>
    %cst_31 = arith.constant dense<0.000000e+00> : vector<16x16xf32>
    %46 = tpu.matmul %41, %43, %cst_31 {dimension_numbers = #tpu.dot_dimension_numbers<[1], [1], [0], [0], [0, 0, 1, 0], [], []>} : vector<16x32xbf16>, vector<16x32xbf16>, vector<16x16xf32> -> vector<16x16xf32>
    %cst_32 = arith.constant dense<0xFF800000> : vector<16xf32>
    %47 = vector.multi_reduction <maximumf>, %46, %cst_32 [1] : vector<16x16xf32> to vector<16xf32>
    %48 = vector.shape_cast %47 : vector<16xf32> to vector<16x1xf32>
    %49 = vector.broadcast %48 : vector<16x1xf32> to vector<16x16xf32>
    %50 = arith.subf %46, %49 : vector<16x16xf32>
    %51 = math.exp %50 : vector<16x16xf32>
    %cst_33 = arith.constant dense<0.000000e+00> : vector<16xf32>
    %52 = vector.multi_reduction <add>, %51, %cst_33 [1] : vector<16x16xf32> to vector<16xf32>
    %53 = vector.shape_cast %52 : vector<16xf32> to vector<16x1xf32>
    %54 = tpu.reciprocal %53 {approx = true} : vector<16x1xf32> -> vector<16x1xf32>
    %55 = vector.broadcast %54 : vector<16x1xf32> to vector<16x16xf32>
    %56 = arith.mulf %51, %55 : vector<16x16xf32>
    %57 = arith.truncf %56 : vector<16x16xf32> to vector<16x16xbf16>
    %cst_34 = arith.constant dense<0.000000e+00> : vector<16x32xf32>
    %58 = tpu.matmul %57, %45, %cst_34 {dimension_numbers = #tpu.dot_dimension_numbers<[1], [0], [0], [1], [0, 0, 1, 1], [], []>} : vector<16x16xbf16>, vector<16x32xbf16>, vector<16x32xf32> -> vector<16x32xf32>
    %59 = arith.truncf %58 : vector<16x32xf32> to vector<16x32xbf16>
    %c0_35 = arith.constant 0 : index
    %c0_36 = arith.constant 0 : index
    %c96 = arith.constant 96 : index
    %60 = vector.load %arg2[%c0_35, %c0_36, %c96] : memref<1x16x128xbf16, #tpu.memory_space<vmem>>, vector<1x16x32xbf16>
    %61 = vector.shape_cast %60 : vector<1x16x32xbf16> to vector<16x32xbf16>
    %c0_37 = arith.constant 0 : index
    %c0_38 = arith.constant 0 : index
    %c96_39 = arith.constant 96 : index
    %62 = vector.load %arg3[%c0_37, %c0_38, %c96_39] : memref<1x16x128xbf16, #tpu.memory_space<vmem>>, vector<1x16x32xbf16>
    %63 = vector.shape_cast %62 : vector<1x16x32xbf16> to vector<16x32xbf16>
    %c0_40 = arith.constant 0 : index
    %c0_41 = arith.constant 0 : index
    %c96_42 = arith.constant 96 : index
    %64 = vector.load %arg4[%c0_40, %c0_41, %c96_42] : memref<1x16x128xbf16, #tpu.memory_space<vmem>>, vector<1x16x32xbf16>
    %65 = vector.shape_cast %64 : vector<1x16x32xbf16> to vector<16x32xbf16>
    %cst_43 = arith.constant dense<0.000000e+00> : vector<16x16xf32>
    %66 = tpu.matmul %61, %63, %cst_43 {dimension_numbers = #tpu.dot_dimension_numbers<[1], [1], [0], [0], [0, 0, 1, 0], [], []>} : vector<16x32xbf16>, vector<16x32xbf16>, vector<16x16xf32> -> vector<16x16xf32>
    %cst_44 = arith.constant dense<0xFF800000> : vector<16xf32>
    %67 = vector.multi_reduction <maximumf>, %66, %cst_44 [1] : vector<16x16xf32> to vector<16xf32>
    %68 = vector.shape_cast %67 : vector<16xf32> to vector<16x1xf32>
    %69 = vector.broadcast %68 : vector<16x1xf32> to vector<16x16xf32>
    %70 = arith.subf %66, %69 : vector<16x16xf32>
    %71 = math.exp %70 : vector<16x16xf32>
    %cst_45 = arith.constant dense<0.000000e+00> : vector<16xf32>
    %72 = vector.multi_reduction <add>, %71, %cst_45 [1] : vector<16x16xf32> to vector<16xf32>
    %73 = vector.shape_cast %72 : vector<16xf32> to vector<16x1xf32>
    %74 = tpu.reciprocal %73 {approx = true} : vector<16x1xf32> -> vector<16x1xf32>
    %75 = vector.broadcast %74 : vector<16x1xf32> to vector<16x16xf32>
    %76 = arith.mulf %71, %75 : vector<16x16xf32>
    %77 = arith.truncf %76 : vector<16x16xf32> to vector<16x16xbf16>
    %cst_46 = arith.constant dense<0.000000e+00> : vector<16x32xf32>
    %78 = tpu.matmul %77, %65, %cst_46 {dimension_numbers = #tpu.dot_dimension_numbers<[1], [0], [0], [1], [0, 0, 1, 1], [], []>} : vector<16x16xbf16>, vector<16x32xbf16>, vector<16x32xf32> -> vector<16x32xf32>
    %79 = arith.truncf %78 : vector<16x32xf32> to vector<16x32xbf16>
    %80 = tpu.concatenate %19, %39, %59, %79 in 1 : vector<16x32xbf16>, vector<16x32xbf16>, vector<16x32xbf16>, vector<16x32xbf16> -> vector<16x128xbf16>
    %c0_47 = arith.constant 0 : index
    %c0_48 = arith.constant 0 : index
    %c0_49 = arith.constant 0 : index
    %81 = vector.load %arg5[%c0_47, %c0_48, %c0_49] : memref<1x16x128xbf16, #tpu.memory_space<vmem>>, vector<1x16x128xbf16>
    %82 = vector.shape_cast %81 : vector<1x16x128xbf16> to vector<16x128xbf16>
    %83 = vector.shape_cast %80 : vector<16x128xbf16> to vector<1x16x128xbf16>
    tpu.vector_store %arg5[%c0_47, %c0_48, %c0_49], %83 {strides = array<i32>} : memref<1x16x128xbf16, #tpu.memory_space<vmem>>, vector<1x16x128xbf16>,
    return
  }
  func.func @transform_0(%arg0: i32, %arg1: i32) -> (i32, i32, i32) {
    %c0_i32 = arith.constant 0 : i32
    %c0_i32_0 = arith.constant 0 : i32
    return %arg0, %c0_i32, %arg1 : i32, i32, i32
  }
  func.func @transform_1(%arg0: i32, %arg1: i32) -> (i32, i32, i32) {
    %c1_i32 = arith.constant 1 : i32
    %0 = arith.addi %c1_i32, %arg1 : i32
    %c0_i32 = arith.constant 0 : i32
    %c0_i32_0 = arith.constant 0 : i32
    return %arg0, %c0_i32, %0 : i32, i32, i32
  }
  func.func @transform_2(%arg0: i32, %arg1: i32) -> (i32, i32, i32) {
    %c2_i32 = arith.constant 2 : i32
    %0 = arith.addi %c2_i32, %arg1 : i32
    %c0_i32 = arith.constant 0 : i32
    %c0_i32_0 = arith.constant 0 : i32
    return %arg0, %c0_i32, %0 : i32, i32, i32
  }
  func.func @transform_3(%arg0: i32, %arg1: i32) -> (i32, i32, i32) {
    %c0_i32 = arith.constant 0 : i32
    %c0_i32_0 = arith.constant 0 : i32
    return %arg0, %c0_i32, %arg1 : i32, i32, i32
  }
}

module attributes {stable_mosaic.version = 11 : i64} {
  func.func @_proj_mlp_kernel(%arg0: i32, %arg1: i32, %arg2: memref<1x16x128xbf16, #tpu.memory_space<vmem>>, %arg3: memref<1x16x128xf32, #tpu.memory_space<vmem>>, %arg4: memref<128x128xbf16, #tpu.memory_space<vmem>>, %arg5: memref<1x128xf32, #tpu.memory_space<vmem>>, %arg6: memref<1x128xf32, #tpu.memory_space<vmem>>, %arg7: memref<1x128xf32, #tpu.memory_space<vmem>>, %arg8: memref<128x512xbf16, #tpu.memory_space<vmem>>, %arg9: memref<1x512xf32, #tpu.memory_space<vmem>>, %arg10: memref<512x128xbf16, #tpu.memory_space<vmem>>, %arg11: memref<1x128xf32, #tpu.memory_space<vmem>>, %arg12: memref<1x16x128xf32, #tpu.memory_space<vmem>>) attributes {dimension_semantics = [#tpu.dimension_semantics<parallel>, #tpu.dimension_semantics<parallel>], iteration_bounds = array<i64: 2, 1>, scalar_prefetch = 0 : i64, scratch_operands = 0 : i64, tpu.core_type = #tpu.core_type<tc>, window_params = [{transform_indices = @transform_0, window_bounds = array<i64: 1, 16, 128>}, {transform_indices = @transform_1, window_bounds = array<i64: 1, 16, 128>}, {pipeline_mode = #tpu.pipeline_mode<synchronous>, transform_indices = @transform_2, window_bounds = array<i64: 128, 128>}, {pipeline_mode = #tpu.pipeline_mode<synchronous>, transform_indices = @transform_3, window_bounds = array<i64: 1, 128>}, {pipeline_mode = #tpu.pipeline_mode<synchronous>, transform_indices = @transform_4, window_bounds = array<i64: 1, 128>}, {pipeline_mode = #tpu.pipeline_mode<synchronous>, transform_indices = @transform_5, window_bounds = array<i64: 1, 128>}, {pipeline_mode = #tpu.pipeline_mode<synchronous>, transform_indices = @transform_6, window_bounds = array<i64: 128, 512>}, {pipeline_mode = #tpu.pipeline_mode<synchronous>, transform_indices = @transform_7, window_bounds = array<i64: 1, 512>}, {pipeline_mode = #tpu.pipeline_mode<synchronous>, transform_indices = @transform_8, window_bounds = array<i64: 512, 128>}, {pipeline_mode = #tpu.pipeline_mode<synchronous>, transform_indices = @transform_9, window_bounds = array<i64: 1, 128>}, {transform_indices = @transform_10, window_bounds = array<i64: 1, 16, 128>}]} {
    %c0 = arith.constant 0 : index
    %c0_0 = arith.constant 0 : index
    %c0_1 = arith.constant 0 : index
    %0 = vector.load %arg2[%c0, %c0_0, %c0_1] : memref<1x16x128xbf16, #tpu.memory_space<vmem>>, vector<1x16x128xbf16>
    %1 = vector.shape_cast %0 : vector<1x16x128xbf16> to vector<16x128xbf16>
    %c0_2 = arith.constant 0 : index
    %c0_3 = arith.constant 0 : index
    %2 = vector.load %arg4[%c0_2, %c0_3] : memref<128x128xbf16, #tpu.memory_space<vmem>>, vector<128x128xbf16>
    %cst = arith.constant dense<0.000000e+00> : vector<16x128xf32>
    %3 = tpu.matmul %1, %2, %cst {dimension_numbers = #tpu.dot_dimension_numbers<[1], [0], [0], [1], [0, 0, 1, 1], [], []>} : vector<16x128xbf16>, vector<128x128xbf16>, vector<16x128xf32> -> vector<16x128xf32>
    %c0_4 = arith.constant 0 : index
    %c0_5 = arith.constant 0 : index
    %4 = vector.load %arg5[%c0_4, %c0_5] : memref<1x128xf32, #tpu.memory_space<vmem>>, vector<1x128xf32>
    %5 = vector.broadcast %4 : vector<1x128xf32> to vector<16x128xf32>
    %6 = arith.addf %3, %5 : vector<16x128xf32>
    %c0_6 = arith.constant 0 : index
    %c0_7 = arith.constant 0 : index
    %c0_8 = arith.constant 0 : index
    %7 = vector.load %arg3[%c0_6, %c0_7, %c0_8] : memref<1x16x128xf32, #tpu.memory_space<vmem>>, vector<1x16x128xf32>
    %8 = vector.shape_cast %7 : vector<1x16x128xf32> to vector<16x128xf32>
    %9 = arith.addf %8, %6 : vector<16x128xf32>
    %c0_9 = arith.constant 0 : index
    %c0_10 = arith.constant 0 : index
    %10 = vector.load %arg6[%c0_9, %c0_10] : memref<1x128xf32, #tpu.memory_space<vmem>>, vector<1x128xf32>
    %c0_11 = arith.constant 0 : index
    %c0_12 = arith.constant 0 : index
    %11 = vector.load %arg7[%c0_11, %c0_12] : memref<1x128xf32, #tpu.memory_space<vmem>>, vector<1x128xf32>
    %cst_13 = arith.constant dense<0.000000e+00> : vector<16xf32>
    %12 = vector.multi_reduction <add>, %9, %cst_13 [1] : vector<16x128xf32> to vector<16xf32>
    %13 = vector.shape_cast %12 : vector<16xf32> to vector<16x1xf32>
    %cst_14 = arith.constant 1.280000e+02 : f32
    %14 = vector.broadcast %cst_14 : f32 to vector<16x1xf32>
    %15 = arith.divf %13, %14 : vector<16x1xf32>
    %16 = vector.broadcast %15 : vector<16x1xf32> to vector<16x128xf32>
    %17 = arith.subf %9, %16 : vector<16x128xf32>
    %18 = arith.mulf %17, %17 : vector<16x128xf32>
    %cst_15 = arith.constant dense<0.000000e+00> : vector<16xf32>
    %19 = vector.multi_reduction <add>, %18, %cst_15 [1] : vector<16x128xf32> to vector<16xf32>
    %20 = vector.shape_cast %19 : vector<16xf32> to vector<16x1xf32>
    %cst_16 = arith.constant 1.280000e+02 : f32
    %21 = vector.broadcast %cst_16 : f32 to vector<16x1xf32>
    %22 = arith.divf %20, %21 : vector<16x1xf32>
    %cst_17 = arith.constant 9.99999974E-6 : f32
    %23 = vector.broadcast %cst_17 : f32 to vector<16x1xf32>
    %24 = arith.addf %22, %23 : vector<16x1xf32>
    %25 = math.rsqrt %24 : vector<16x1xf32>
    %26 = vector.broadcast %25 : vector<16x1xf32> to vector<16x128xf32>
    %27 = arith.mulf %17, %26 : vector<16x128xf32>
    %28 = vector.broadcast %10 : vector<1x128xf32> to vector<16x128xf32>
    %29 = arith.mulf %27, %28 : vector<16x128xf32>
    %30 = vector.broadcast %11 : vector<1x128xf32> to vector<16x128xf32>
    %31 = arith.addf %29, %30 : vector<16x128xf32>
    %32 = arith.truncf %31 : vector<16x128xf32> to vector<16x128xbf16>
    %c0_18 = arith.constant 0 : index
    %c0_19 = arith.constant 0 : index
    %33 = vector.load %arg8[%c0_18, %c0_19] : memref<128x512xbf16, #tpu.memory_space<vmem>>, vector<128x512xbf16>
    %cst_20 = arith.constant dense<0.000000e+00> : vector<16x512xf32>
    %34 = tpu.matmul %32, %33, %cst_20 {dimension_numbers = #tpu.dot_dimension_numbers<[1], [0], [0], [1], [0, 0, 1, 1], [], []>} : vector<16x128xbf16>, vector<128x512xbf16>, vector<16x512xf32> -> vector<16x512xf32>
    %c0_21 = arith.constant 0 : index
    %c0_22 = arith.constant 0 : index
    %35 = vector.load %arg9[%c0_21, %c0_22] : memref<1x512xf32, #tpu.memory_space<vmem>>, vector<1x512xf32>
    %36 = vector.broadcast %35 : vector<1x512xf32> to vector<16x512xf32>
    %37 = arith.addf %34, %36 : vector<16x512xf32>
    %38 = arith.mulf %37, %37 : vector<16x512xf32>
    %39 = arith.mulf %37, %38 : vector<16x512xf32>
    %cst_23 = arith.constant 4.471500e-02 : f32
    %40 = vector.broadcast %cst_23 : f32 to vector<16x512xf32>
    %41 = arith.mulf %40, %39 : vector<16x512xf32>
    %42 = arith.addf %37, %41 : vector<16x512xf32>
    %cst_24 = arith.constant 0.797884583 : f32
    %43 = vector.broadcast %cst_24 : f32 to vector<16x512xf32>
    %44 = arith.mulf %43, %42 : vector<16x512xf32>
    %45 = math.tanh %44 : vector<16x512xf32>
    %cst_25 = arith.constant 1.000000e+00 : f32
    %46 = vector.broadcast %cst_25 : f32 to vector<16x512xf32>
    %47 = arith.addf %46, %45 : vector<16x512xf32>
    %cst_26 = arith.constant 5.000000e-01 : f32
    %48 = vector.broadcast %cst_26 : f32 to vector<16x512xf32>
    %49 = arith.mulf %48, %47 : vector<16x512xf32>
    %50 = arith.mulf %37, %49 : vector<16x512xf32>
    %51 = arith.truncf %50 : vector<16x512xf32> to vector<16x512xbf16>
    %c0_27 = arith.constant 0 : index
    %c0_28 = arith.constant 0 : index
    %52 = vector.load %arg10[%c0_27, %c0_28] : memref<512x128xbf16, #tpu.memory_space<vmem>>, vector<512x128xbf16>
    %cst_29 = arith.constant dense<0.000000e+00> : vector<16x128xf32>
    %53 = tpu.matmul %51, %52, %cst_29 {dimension_numbers = #tpu.dot_dimension_numbers<[1], [0], [0], [1], [0, 0, 1, 1], [], []>} : vector<16x512xbf16>, vector<512x128xbf16>, vector<16x128xf32> -> vector<16x128xf32>
    %c0_30 = arith.constant 0 : index
    %c0_31 = arith.constant 0 : index
    %54 = vector.load %arg11[%c0_30, %c0_31] : memref<1x128xf32, #tpu.memory_space<vmem>>, vector<1x128xf32>
    %55 = vector.broadcast %54 : vector<1x128xf32> to vector<16x128xf32>
    %56 = arith.addf %53, %55 : vector<16x128xf32>
    %57 = arith.addf %9, %56 : vector<16x128xf32>
    %c0_32 = arith.constant 0 : index
    %c0_33 = arith.constant 0 : index
    %c0_34 = arith.constant 0 : index
    %58 = vector.load %arg12[%c0_32, %c0_33, %c0_34] : memref<1x16x128xf32, #tpu.memory_space<vmem>>, vector<1x16x128xf32>
    %59 = vector.shape_cast %58 : vector<1x16x128xf32> to vector<16x128xf32>
    %60 = vector.shape_cast %57 : vector<16x128xf32> to vector<1x16x128xf32>
    tpu.vector_store %arg12[%c0_32, %c0_33, %c0_34], %60 {strides = array<i32>} : memref<1x16x128xf32, #tpu.memory_space<vmem>>, vector<1x16x128xf32>,
    return
  }
  func.func @transform_0(%arg0: i32, %arg1: i32) -> (i32, i32, i32) {
    %c0_i32 = arith.constant 0 : i32
    %c0_i32_0 = arith.constant 0 : i32
    return %arg0, %arg1, %c0_i32 : i32, i32, i32
  }
  func.func @transform_1(%arg0: i32, %arg1: i32) -> (i32, i32, i32) {
    %c0_i32 = arith.constant 0 : i32
    %c0_i32_0 = arith.constant 0 : i32
    return %arg0, %arg1, %c0_i32 : i32, i32, i32
  }
  func.func @transform_2(%arg0: i32, %arg1: i32) -> (i32, i32) {
    %c0_i32 = arith.constant 0 : i32
    %c0_i32_0 = arith.constant 0 : i32
    %c0_i32_1 = arith.constant 0 : i32
    return %c0_i32, %c0_i32_0 : i32, i32
  }
  func.func @transform_3(%arg0: i32, %arg1: i32) -> (i32, i32) {
    %c0_i32 = arith.constant 0 : i32
    %c0_i32_0 = arith.constant 0 : i32
    %c0_i32_1 = arith.constant 0 : i32
    return %c0_i32, %c0_i32_0 : i32, i32
  }
  func.func @transform_4(%arg0: i32, %arg1: i32) -> (i32, i32) {
    %c0_i32 = arith.constant 0 : i32
    %c0_i32_0 = arith.constant 0 : i32
    %c0_i32_1 = arith.constant 0 : i32
    return %c0_i32, %c0_i32_0 : i32, i32
  }
  func.func @transform_5(%arg0: i32, %arg1: i32) -> (i32, i32) {
    %c0_i32 = arith.constant 0 : i32
    %c0_i32_0 = arith.constant 0 : i32
    %c0_i32_1 = arith.constant 0 : i32
    return %c0_i32, %c0_i32_0 : i32, i32
  }
  func.func @transform_6(%arg0: i32, %arg1: i32) -> (i32, i32) {
    %c0_i32 = arith.constant 0 : i32
    %c0_i32_0 = arith.constant 0 : i32
    %c0_i32_1 = arith.constant 0 : i32
    return %c0_i32, %c0_i32_0 : i32, i32
  }
  func.func @transform_7(%arg0: i32, %arg1: i32) -> (i32, i32) {
    %c0_i32 = arith.constant 0 : i32
    %c0_i32_0 = arith.constant 0 : i32
    %c0_i32_1 = arith.constant 0 : i32
    return %c0_i32, %c0_i32_0 : i32, i32
  }
  func.func @transform_8(%arg0: i32, %arg1: i32) -> (i32, i32) {
    %c0_i32 = arith.constant 0 : i32
    %c0_i32_0 = arith.constant 0 : i32
    %c0_i32_1 = arith.constant 0 : i32
    return %c0_i32, %c0_i32_0 : i32, i32
  }
  func.func @transform_9(%arg0: i32, %arg1: i32) -> (i32, i32) {
    %c0_i32 = arith.constant 0 : i32
    %c0_i32_0 = arith.constant 0 : i32
    %c0_i32_1 = arith.constant 0 : i32
    return %c0_i32, %c0_i32_0 : i32, i32
  }
  func.func @transform_10(%arg0: i32, %arg1: i32) -> (i32, i32, i32) {
    %c0_i32 = arith.constant 0 : i32
    %c0_i32_0 = arith.constant 0 : i32
    return %arg0, %arg1, %c0_i32 : i32, i32, i32
  }
}

module attributes {stable_mosaic.version = 11 : i64} {
  func.func @_proj_mlp_kernel(%arg0: i32, %arg1: i32, %arg2: memref<1x16x128xbf16, #tpu.memory_space<vmem>>, %arg3: memref<1x16x128xf32, #tpu.memory_space<vmem>>, %arg4: memref<128x128xbf16, #tpu.memory_space<vmem>>, %arg5: memref<1x128xf32, #tpu.memory_space<vmem>>, %arg6: memref<1x128xf32, #tpu.memory_space<vmem>>, %arg7: memref<1x128xf32, #tpu.memory_space<vmem>>, %arg8: memref<128x512xbf16, #tpu.memory_space<vmem>>, %arg9: memref<1x512xf32, #tpu.memory_space<vmem>>, %arg10: memref<512x128xbf16, #tpu.memory_space<vmem>>, %arg11: memref<1x128xf32, #tpu.memory_space<vmem>>, %arg12: memref<1x16x128xf32, #tpu.memory_space<vmem>>) attributes {dimension_semantics = [#tpu.dimension_semantics<parallel>, #tpu.dimension_semantics<parallel>], iteration_bounds = array<i64: 2, 1>, scalar_prefetch = 0 : i64, scratch_operands = 0 : i64, tpu.core_type = #tpu.core_type<tc>, window_params = [{transform_indices = @transform_0, window_bounds = array<i64: 1, 16, 128>}, {transform_indices = @transform_1, window_bounds = array<i64: 1, 16, 128>}, {pipeline_mode = #tpu.pipeline_mode<synchronous>, transform_indices = @transform_2, window_bounds = array<i64: 128, 128>}, {pipeline_mode = #tpu.pipeline_mode<synchronous>, transform_indices = @transform_3, window_bounds = array<i64: 1, 128>}, {pipeline_mode = #tpu.pipeline_mode<synchronous>, transform_indices = @transform_4, window_bounds = array<i64: 1, 128>}, {pipeline_mode = #tpu.pipeline_mode<synchronous>, transform_indices = @transform_5, window_bounds = array<i64: 1, 128>}, {pipeline_mode = #tpu.pipeline_mode<synchronous>, transform_indices = @transform_6, window_bounds = array<i64: 128, 512>}, {pipeline_mode = #tpu.pipeline_mode<synchronous>, transform_indices = @transform_7, window_bounds = array<i64: 1, 512>}, {pipeline_mode = #tpu.pipeline_mode<synchronous>, transform_indices = @transform_8, window_bounds = array<i64: 512, 128>}, {pipeline_mode = #tpu.pipeline_mode<synchronous>, transform_indices = @transform_9, window_bounds = array<i64: 1, 128>}, {transform_indices = @transform_10, window_bounds = array<i64: 1, 16, 128>}]} {
    %c0 = arith.constant 0 : index
    %c0_0 = arith.constant 0 : index
    %c0_1 = arith.constant 0 : index
    %0 = vector.load %arg2[%c0, %c0_0, %c0_1] : memref<1x16x128xbf16, #tpu.memory_space<vmem>>, vector<1x16x128xbf16>
    %1 = vector.shape_cast %0 : vector<1x16x128xbf16> to vector<16x128xbf16>
    %c0_2 = arith.constant 0 : index
    %c0_3 = arith.constant 0 : index
    %2 = vector.load %arg4[%c0_2, %c0_3] : memref<128x128xbf16, #tpu.memory_space<vmem>>, vector<128x128xbf16>
    %cst = arith.constant dense<0.000000e+00> : vector<16x128xf32>
    %3 = tpu.matmul %1, %2, %cst {dimension_numbers = #tpu.dot_dimension_numbers<[1], [0], [0], [1], [0, 0, 1, 1], [], []>} : vector<16x128xbf16>, vector<128x128xbf16>, vector<16x128xf32> -> vector<16x128xf32>
    %c0_4 = arith.constant 0 : index
    %c0_5 = arith.constant 0 : index
    %4 = vector.load %arg5[%c0_4, %c0_5] : memref<1x128xf32, #tpu.memory_space<vmem>>, vector<1x128xf32>
    %5 = vector.broadcast %4 : vector<1x128xf32> to vector<16x128xf32>
    %6 = arith.addf %3, %5 : vector<16x128xf32>
    %c0_6 = arith.constant 0 : index
    %c0_7 = arith.constant 0 : index
    %c0_8 = arith.constant 0 : index
    %7 = vector.load %arg3[%c0_6, %c0_7, %c0_8] : memref<1x16x128xf32, #tpu.memory_space<vmem>>, vector<1x16x128xf32>
    %8 = vector.shape_cast %7 : vector<1x16x128xf32> to vector<16x128xf32>
    %9 = arith.addf %8, %6 : vector<16x128xf32>
    %c0_9 = arith.constant 0 : index
    %c0_10 = arith.constant 0 : index
    %10 = vector.load %arg6[%c0_9, %c0_10] : memref<1x128xf32, #tpu.memory_space<vmem>>, vector<1x128xf32>
    %c0_11 = arith.constant 0 : index
    %c0_12 = arith.constant 0 : index
    %11 = vector.load %arg7[%c0_11, %c0_12] : memref<1x128xf32, #tpu.memory_space<vmem>>, vector<1x128xf32>
    %cst_13 = arith.constant dense<0.000000e+00> : vector<16xf32>
    %12 = vector.multi_reduction <add>, %9, %cst_13 [1] : vector<16x128xf32> to vector<16xf32>
    %13 = vector.shape_cast %12 : vector<16xf32> to vector<16x1xf32>
    %cst_14 = arith.constant 1.280000e+02 : f32
    %14 = vector.broadcast %cst_14 : f32 to vector<16x1xf32>
    %15 = arith.divf %13, %14 : vector<16x1xf32>
    %16 = vector.broadcast %15 : vector<16x1xf32> to vector<16x128xf32>
    %17 = arith.subf %9, %16 : vector<16x128xf32>
    %18 = arith.mulf %17, %17 : vector<16x128xf32>
    %cst_15 = arith.constant dense<0.000000e+00> : vector<16xf32>
    %19 = vector.multi_reduction <add>, %18, %cst_15 [1] : vector<16x128xf32> to vector<16xf32>
    %20 = vector.shape_cast %19 : vector<16xf32> to vector<16x1xf32>
    %cst_16 = arith.constant 1.280000e+02 : f32
    %21 = vector.broadcast %cst_16 : f32 to vector<16x1xf32>
    %22 = arith.divf %20, %21 : vector<16x1xf32>
    %cst_17 = arith.constant 9.99999974E-6 : f32
    %23 = vector.broadcast %cst_17 : f32 to vector<16x1xf32>
    %24 = arith.addf %22, %23 : vector<16x1xf32>
    %25 = math.rsqrt %24 : vector<16x1xf32>
    %26 = vector.broadcast %25 : vector<16x1xf32> to vector<16x128xf32>
    %27 = arith.mulf %17, %26 : vector<16x128xf32>
    %28 = vector.broadcast %10 : vector<1x128xf32> to vector<16x128xf32>
    %29 = arith.mulf %27, %28 : vector<16x128xf32>
    %30 = vector.broadcast %11 : vector<1x128xf32> to vector<16x128xf32>
    %31 = arith.addf %29, %30 : vector<16x128xf32>
    %32 = arith.truncf %31 : vector<16x128xf32> to vector<16x128xbf16>
    %c0_18 = arith.constant 0 : index
    %c0_19 = arith.constant 0 : index
    %33 = vector.load %arg8[%c0_18, %c0_19] : memref<128x512xbf16, #tpu.memory_space<vmem>>, vector<128x512xbf16>
    %cst_20 = arith.constant dense<0.000000e+00> : vector<16x512xf32>
    %34 = tpu.matmul %32, %33, %cst_20 {dimension_numbers = #tpu.dot_dimension_numbers<[1], [0], [0], [1], [0, 0, 1, 1], [], []>} : vector<16x128xbf16>, vector<128x512xbf16>, vector<16x512xf32> -> vector<16x512xf32>
    %c0_21 = arith.constant 0 : index
    %c0_22 = arith.constant 0 : index
    %35 = vector.load %arg9[%c0_21, %c0_22] : memref<1x512xf32, #tpu.memory_space<vmem>>, vector<1x512xf32>
    %36 = vector.broadcast %35 : vector<1x512xf32> to vector<16x512xf32>
    %37 = arith.addf %34, %36 : vector<16x512xf32>
    %38 = arith.mulf %37, %37 : vector<16x512xf32>
    %39 = arith.mulf %37, %38 : vector<16x512xf32>
    %cst_23 = arith.constant 4.471500e-02 : f32
    %40 = vector.broadcast %cst_23 : f32 to vector<16x512xf32>
    %41 = arith.mulf %40, %39 : vector<16x512xf32>
    %42 = arith.addf %37, %41 : vector<16x512xf32>
    %cst_24 = arith.constant 0.797884583 : f32
    %43 = vector.broadcast %cst_24 : f32 to vector<16x512xf32>
    %44 = arith.mulf %43, %42 : vector<16x512xf32>
    %45 = math.tanh %44 : vector<16x512xf32>
    %cst_25 = arith.constant 1.000000e+00 : f32
    %46 = vector.broadcast %cst_25 : f32 to vector<16x512xf32>
    %47 = arith.addf %46, %45 : vector<16x512xf32>
    %cst_26 = arith.constant 5.000000e-01 : f32
    %48 = vector.broadcast %cst_26 : f32 to vector<16x512xf32>
    %49 = arith.mulf %48, %47 : vector<16x512xf32>
    %50 = arith.mulf %37, %49 : vector<16x512xf32>
    %51 = arith.truncf %50 : vector<16x512xf32> to vector<16x512xbf16>
    %c0_27 = arith.constant 0 : index
    %c0_28 = arith.constant 0 : index
    %52 = vector.load %arg10[%c0_27, %c0_28] : memref<512x128xbf16, #tpu.memory_space<vmem>>, vector<512x128xbf16>
    %cst_29 = arith.constant dense<0.000000e+00> : vector<16x128xf32>
    %53 = tpu.matmul %51, %52, %cst_29 {dimension_numbers = #tpu.dot_dimension_numbers<[1], [0], [0], [1], [0, 0, 1, 1], [], []>} : vector<16x512xbf16>, vector<512x128xbf16>, vector<16x128xf32> -> vector<16x128xf32>
    %c0_30 = arith.constant 0 : index
    %c0_31 = arith.constant 0 : index
    %54 = vector.load %arg11[%c0_30, %c0_31] : memref<1x128xf32, #tpu.memory_space<vmem>>, vector<1x128xf32>
    %55 = vector.broadcast %54 : vector<1x128xf32> to vector<16x128xf32>
    %56 = arith.addf %53, %55 : vector<16x128xf32>
    %57 = arith.addf %9, %56 : vector<16x128xf32>
    %c0_32 = arith.constant 0 : index
    %c0_33 = arith.constant 0 : index
    %c0_34 = arith.constant 0 : index
    %58 = vector.load %arg12[%c0_32, %c0_33, %c0_34] : memref<1x16x128xf32, #tpu.memory_space<vmem>>, vector<1x16x128xf32>
    %59 = vector.shape_cast %58 : vector<1x16x128xf32> to vector<16x128xf32>
    %60 = vector.shape_cast %57 : vector<16x128xf32> to vector<1x16x128xf32>
    tpu.vector_store %arg12[%c0_32, %c0_33, %c0_34], %60 {strides = array<i32>} : memref<1x16x128xf32, #tpu.memory_space<vmem>>, vector<1x16x128xf32>,
    return
  }
  func.func @transform_0(%arg0: i32, %arg1: i32) -> (i32, i32, i32) {
    %c0_i32 = arith.constant 0 : i32
    %c0_i32_0 = arith.constant 0 : i32
    return %arg0, %arg1, %c0_i32 : i32, i32, i32
  }
  func.func @transform_1(%arg0: i32, %arg1: i32) -> (i32, i32, i32) {
    %c0_i32 = arith.constant 0 : i32
    %c0_i32_0 = arith.constant 0 : i32
    return %arg0, %arg1, %c0_i32 : i32, i32, i32
  }
  func.func @transform_2(%arg0: i32, %arg1: i32) -> (i32, i32) {
    %c0_i32 = arith.constant 0 : i32
    %c0_i32_0 = arith.constant 0 : i32
    %c0_i32_1 = arith.constant 0 : i32
    return %c0_i32, %c0_i32_0 : i32, i32
  }
  func.func @transform_3(%arg0: i32, %arg1: i32) -> (i32, i32) {
    %c0_i32 = arith.constant 0 : i32
    %c0_i32_0 = arith.constant 0 : i32
    %c0_i32_1 = arith.constant 0 : i32
    return %c0_i32, %c0_i32_0 : i32, i32
  }
  func.func @transform_4(%arg0: i32, %arg1: i32) -> (i32, i32) {
    %c0_i32 = arith.constant 0 : i32
    %c0_i32_0 = arith.constant 0 : i32
    %c0_i32_1 = arith.constant 0 : i32
    return %c0_i32, %c0_i32_0 : i32, i32
  }
  func.func @transform_5(%arg0: i32, %arg1: i32) -> (i32, i32) {
    %c0_i32 = arith.constant 0 : i32
    %c0_i32_0 = arith.constant 0 : i32
    %c0_i32_1 = arith.constant 0 : i32
    return %c0_i32, %c0_i32_0 : i32, i32
  }
  func.func @transform_6(%arg0: i32, %arg1: i32) -> (i32, i32) {
    %c0_i32 = arith.constant 0 : i32
    %c0_i32_0 = arith.constant 0 : i32
    %c0_i32_1 = arith.constant 0 : i32
    return %c0_i32, %c0_i32_0 : i32, i32
  }
  func.func @transform_7(%arg0: i32, %arg1: i32) -> (i32, i32) {
    %c0_i32 = arith.constant 0 : i32
    %c0_i32_0 = arith.constant 0 : i32
    %c0_i32_1 = arith.constant 0 : i32
    return %c0_i32, %c0_i32_0 : i32, i32
  }
  func.func @transform_8(%arg0: i32, %arg1: i32) -> (i32, i32) {
    %c0_i32 = arith.constant 0 : i32
    %c0_i32_0 = arith.constant 0 : i32
    %c0_i32_1 = arith.constant 0 : i32
    return %c0_i32, %c0_i32_0 : i32, i32
  }
  func.func @transform_9(%arg0: i32, %arg1: i32) -> (i32, i32) {
    %c0_i32 = arith.constant 0 : i32
    %c0_i32_0 = arith.constant 0 : i32
    %c0_i32_1 = arith.constant 0 : i32
    return %c0_i32, %c0_i32_0 : i32, i32
  }
  func.func @transform_10(%arg0: i32, %arg1: i32) -> (i32, i32, i32) {
    %c0_i32 = arith.constant 0 : i32
    %c0_i32_0 = arith.constant 0 : i32
    return %arg0, %arg1, %c0_i32 : i32, i32, i32
  }
}

</mosaic_0001>

<bundles_post_ra>
// kernel: transformer_encoder_pallas.6
= control target key start
LH: loop header
LB: loop body
LE: loop exit
PB: predicated region body
PF: predicated region fallthrough
CT: control target
= control target key end

     0   :  { %s1039_s21 = smov 0   ;;  %s1041_s22 = smov 0   ;;  %s1179_s0 = inlined_call_operand.vmem [shape: f32[2,16,128], index: 0, kind: input, shape index: {}]   ;;  %s1180_s1 = inlined_call_operand.vmem [shape: f32[2,16,128], index: 1, kind: input, shape index: {}]   ;;  %s1181_s2 = inlined_call_operand.vmem [shape: f32[1,128], index: 2, kind: input, shape index: {}]   ;;  %s1182_s3 = inlined_call_operand.vmem [shape: f32[1,128], index: 3, kind: input, shape index: {}]   ;;  %s1183_s4 = inlined_call_operand.vmem [shape: bf16[128,384], index: 4, kind: input, shape index: {}]   ;;  %s1184_s5 = inlined_call_operand.vmem [shape: f32[2,16,128], index: 5, kind: output, shape index: {0}]   ;;  %s1185_s6 = inlined_call_operand.vmem [shape: bf16[2,16,384], index: 6, kind: output, shape index: {1}]  }
   0x1   :  { %s1043_s23 = smov 0  }
   0x2 LB: > { %s29_s24 = sadd.s32 1, %s995_s22  ;;  %p837_p0 = scmp.ge.s32.totalorder %s999_s23, 1  ;;  %s999_s23 = sphi %s1043_s23, %s17_s23   ;;  %s995_s22 = sphi %s1041_s22, %s1187_s22   ;;  %s991_s21 = sphi %s1039_s21, %s1186_s21  }
   0x3   : > { %p31_p1 = scmp.ge.s32.totalorder %s29_s24, 2  ;;  %p255_p2 = scmp.lt.s32.totalorder %s999_s23, 3 }
   0x5   : > { %s1189_s24 = smov (%p31_p1, %s29_s24), 0  ;;  %p256_p3 = pnand %p837_p0, %p255_p2 }
   0x6   : > { %p313_p4 = scmp.lt.s32.totalorder (!%p256_p3), %s991_s21, 1 }
   0x7   : > { %259 = sbr.rel (%p256_p3) target bundleno = 533 (0x215), region = 40 }
   0xc   : > { %s1191_s21 = smov (!%p313_p4, %s991_s21), 1  ;;  %v941_v6 = vld [vmem:[%s1183_s4 + $0xac] ss:$12 sps:$4 sm:$0xff]   ;;  %v943_v7 = vld [vmem:[%s1183_s4 + $0xa8] ss:$12 sps:$4 sm:$0xff]   ;;  %v1001_v8 = vmov 0.0  }
   0xd   : > { %s877_s25 = sshll.u32 %s1191_s21, 4  ;;  %893 = vmatprep.subr.bf16.mxu1 %v1001_v8  ;;  %v944_v9 = vld [vmem:[%s1183_s4 + $0xb0] ss:$12 sps:$4 sm:$0xff]   ;;  %564 = vmatprep.subr.bf16.mxu0 %v941_v6  ;;  %v945_v18 = vld [vmem:[%s1183_s4 + $0x94] ss:$12 sps:$4 sm:$0xff]   ;;  %v1002_v31 = vmov 0  }
   0xe   : > { %s320_s28 = scalar_lea.vmem %s1179_s0, %s877_s25  ;;  %s330_s7 = scalar_lea.vmem %s1180_s1, %s877_s25  ;;  %565 = vmatpush1.bf16.msra.mxu0 %v943_v7  ;;  %894 = vmatpush3.bf16.msra.mxu1 %v944_v9  ;;  %v947_v19 = vld [vmem:[%s1183_s4 + $0x90] ss:$12 sps:$4 sm:$0xff]   ;;  %v948_v20 = vld [vmem:[%s1183_s4 + $0x98] ss:$12 sps:$4 sm:$0xff]   ;;  %v952_v23 = vld [vmem:[%s1183_s4 + $0x80] ss:$12 sps:$4 sm:$0xff]  }
   0xf   : > { %s340_s10 = scalar_lea.vmem %s1184_s5, %s877_s25  ;;  %v354_v0 = vld [vmem:[%s320_s28] sm:$0xff]  ;;  %v355_v2 = vld [vmem:[%s320_s28 + $0x8] sm:$0xff]  ;;  %895 = vmatprep.subr.bf16.mxu1 %v1001_v8  ;;  %566 = vmatprep.subr.bf16.mxu0 %v945_v18  ;;  %v960_v29 = vld [vmem:[%s1183_s4 + $0x50] ss:$12 sps:$4 sm:$0xff]   ;;  %vm1003_vm0 = vmmov 0   ;;  %s913_s27 = smul.u32 24, %s1191_s21 }
  0x10   : > { %v356_v1 = vld [vmem:[%s330_s7] sm:$0xff]  ;;  %v357_v4 = vld [vmem:[%s330_s7 + $0x8] sm:$0xff]  ;;  %596 = vmatprep.mubr.bf16.mxu0 %v1002_v31  ;;  %909 = vmatprep.mubr.msk.bf16.mxu1 %vm1003_vm0, %v1001_v8  ;;  %v963_v32 = vld [vmem:[%s1183_s4 + $0x30] ss:$12 sps:$4 sm:$0xff]  }
  0x11   : > { %v358_v3 = vadd.f32 %v356_v1, %v354_v0  ;;  %v359_v5 = vadd.f32 %v357_v4, %v355_v2  ;;  %v949_v21 = vld [vmem:[%s1183_s4 + $0x7c] ss:$12 sps:$4 sm:$0xff]   ;;  %v951_v22 = vld [vmem:[%s1183_s4 + $0x78] ss:$12 sps:$4 sm:$0xff]   ;;  %v955_v25 = vld [vmem:[%s1183_s4 + $0x60] ss:$12 sps:$4 sm:$0xff]   ;;  %s351_s30 = scalar_lea.vmem %s1185_s6, %s913_s27 }
  0x12   : > { %567 = vmatpush1.bf16.msra.mxu0 %v947_v19  ;;  %896 = vmatpush3.bf16.msra.mxu1 %v948_v20  ;;  %v953_v24 = vld [vmem:[%s1183_s4 + $0x64] ss:$12 sps:$4 sm:$0xff]   ;;  %v956_v26 = vld [vmem:[%s1183_s4 + $0x68] ss:$12 sps:$4 sm:$0xff]   ;;  %v957_v27 = vld [vmem:[%s1183_s4 + $0x4c] ss:$12 sps:$4 sm:$0xff]  }
  0x13   : > { %364 = vadd.xlane.f32.xlu0 %v358_v3  ;;  %360 = vst [vmem:[%s340_s10] sm:$0xff] %v358_v3  ;;  %361 = vst [vmem:[%s340_s10 + $0x8] sm:$0xff] %v359_v5  ;;  %897 = vmatprep.subr.bf16.mxu1 %v1001_v8  ;;  %v959_v28 = vld [vmem:[%s1183_s4 + $0x48] ss:$12 sps:$4 sm:$0xff]   ;;  %v964_v33 = vld [vmem:[%s1183_s4 + $0x38] ss:$12 sps:$4 sm:$0xff]  }
  0x14   : > { %568 = vmatprep.subr.bf16.mxu0 %v949_v21  ;;  %v961_v30 = vld [vmem:[%s1183_s4 + $0x34] ss:$12 sps:$4 sm:$0xff]   ;;  %v965_v34 = vld [vmem:[%s1183_s4 + $0x1c] ss:$12 sps:$4 sm:$0xff]   ;;  %v967_v35 = vld [vmem:[%s1183_s4 + $0x18] ss:$12 sps:$4 sm:$0xff]  }
  0x15   : > { %v968_v36 = vld [vmem:[%s1183_s4 + $0x20] ss:$12 sps:$4 sm:$0xff]   ;;  %v969_v37 = vld [vmem:[%s1183_s4 + $0x4] ss:$12 sps:$4 sm:$0xff]   ;;  %v972_v39 = vld [vmem:[%s1183_s4 + $0x8] ss:$12 sps:$4 sm:$0xff]  }
  0x16   : > { %569 = vmatpush1.bf16.msra.mxu0 %v951_v22  ;;  %898 = vmatpush3.bf16.msra.mxu1 %v952_v23  ;;  %v971_v38 = vld [vmem:[%s1183_s4] ss:$12 sps:$4 sm:$0xff]  }
  0x17   : > { %366 = vadd.xlane.f32.xlu0 %v359_v5  ;;  %899 = vmatprep.subr.bf16.mxu1 %v1001_v8  ;;  %v845_v48 = vld [vmem:[%s1181_s2] ss:$0 sm:$0xff] }
  0x18   : > { %570 = vmatprep.subr.bf16.mxu0 %v953_v24  ;;  %v846_v52 = vld [vmem:[%s1182_s3] ss:$0 sm:$0xff] }
  0x1a   : > { %571 = vmatpush1.bf16.msra.mxu0 %v955_v25  ;;  %900 = vmatpush3.bf16.msra.mxu1 %v956_v26 }
  0x1b   : > { %572 = vmatprep.subr.bf16.mxu0 %v957_v27  ;;  %901 = vmatprep.subr.bf16.mxu1 %v1001_v8 }
  0x1e   : > { %573 = vmatpush1.bf16.msra.mxu0 %v959_v28  ;;  %902 = vmatpush3.bf16.msra.mxu1 %v960_v29 }
  0x1f   : > { %574 = vmatprep.subr.bf16.mxu0 %v961_v30  ;;  %903 = vmatprep.subr.bf16.mxu1 %v1001_v8 }
  0x22   : > { %575 = vmatpush1.bf16.msra.mxu0 %v963_v32  ;;  %904 = vmatpush3.bf16.msra.mxu1 %v964_v33 }
  0x23   : > { %576 = vmatprep.subr.bf16.mxu0 %v965_v34  ;;  %905 = vmatprep.subr.bf16.mxu1 %v1001_v8 }
  0x26   : > { %577 = vmatpush1.bf16.msra.mxu0 %v967_v35  ;;  %906 = vmatpush3.bf16.msra.mxu1 %v968_v36 }
  0x27   : > { %578 = vmatprep.subr.bf16.mxu0 %v969_v37  ;;  %907 = vmatprep.subr.bf16.mxu1 %v1001_v8 }
  0x2a   : > { %579 = vmatpush1.bf16.msra.mxu0 %v971_v38  ;;  %908 = vmatpush3.bf16.msra.mxu1 %v972_v39 }
  0x9c   : > { %v365_v10 = vpop.xlane.xlu0 %364 }
  0x9d   : > { %v369_v11 = vmul.f32 0.0078125, %v365_v10 }
  0x9f   : > { %v1080_v12 = vsub.f32 %v358_v3, %v369_v11 }
  0xa0   : > { %v367_v13 = vpop.xlane.xlu0 %366 }
  0xa1   : > { %v370_v14 = vmul.f32 0.0078125, %v367_v13  ;;  %v373_v15 = vmul.f32 %v1080_v12, %v1080_v12 }
  0xa3   : > { %v1084_v16 = vsub.f32 %v359_v5, %v370_v14  ;;  %375 = vadd.xlane.f32.xlu1 %v373_v15 }
  0xa5   : > { %v374_v17 = vmul.f32 %v1084_v16, %v1084_v16 }
  0xa7   : > { %377 = vadd.xlane.f32.xlu1 %v374_v17 }
 0x12c   : > { %v376_v40 = vpop.xlane.xlu1 %375 }
 0x12d   : > { %v379_v41 = vmul.f32 0.0078125, %v376_v40 }
 0x12f   : > { %v381_v42 = vadd.f32 1e-05, %v379_v41 }
 0x130   : > { %v378_v43 = vpop.xlane.xlu1 %377 }
 0x131   : > { %973 = vrsqrt.f32 %v381_v42  ;;  %v380_v44 = vmul.f32 0.0078125, %v378_v43 }
 0x133   : > { %v382_v45 = vadd.f32 1e-05, %v380_v44 }
 0x135   : > { %975 = vrsqrt.f32 %v382_v45 }
 0x13e   : > { %v974_v46 = vpop.eup %973 }
 0x13f   : > { %v385_v47 = vmul.f32 %v974_v46, %v1080_v12 }
 0x141   : > { %v393_v51 = vmul.f32 %v845_v48, %v385_v47 }
 0x142   : > { %v976_v49 = vpop.eup %975 }
 0x143   : > { %v386_v50 = vmul.f32 %v976_v49, %v1084_v16  ;;  %v401_v54 = vadd.f32 %v846_v52, %v393_v51 }
 0x145   : > { %v394_v53 = vmul.f32 %v845_v48, %v386_v50 }
 0x147   : > { %v402_v55 = vadd.f32 %v846_v52, %v394_v53 }
 0x149   : > { %v403_v56 = vpack.c.bf16 %v402_v55, %v401_v54 }
 0x14b   : > { %597 = vmatmul.mubr.bf16.vlgmr.msra.gmra.mxu0 %v403_v56  ;;  %910 = vmatmul.mubr.bf16.vlgmr.msra.gmra.mxu1 %v403_v56 }
 0x20b   : > { %v598_v57 = vpop.f32.mrf.mxu0  ;;  %v641_v58 = vpop.f32.mrf.mxu1 }
 0x20c   : > { %v881_v59 = vpack.c.bf16 %v641_v58, %v641_v58 }
 0x20d   : > { %v600_v60 = vpop.f32.mrf.mxu0  ;;  %v911_v61 = vpop.f32.mrf.mxu1 }
 0x20e   : > { %669 = vst [vmem:[%s351_s30 + $0x8] sm:$0xf] %v881_v59  ;;  %v880_v62 = vpack.c.bf16 %v600_v60, %v598_v57 }
 0x20f   : > { %v602_v63 = vpop.f32.mrf.mxu0  ;;  %v644_v0 = vpop.f32.mrf.mxu1 }
 0x210   : > { %668 = vst [vmem:[%s351_s30] sm:$0xff] %v880_v62  ;;  %v883_v1 = vpack.c.bf16 %v644_v0, %v644_v0 }
 0x211   : > { %v604_v2 = vpop.f32.mrf.mxu0  ;;  %v912_v3 = vpop.f32.mrf.mxu1 }
 0x212   : > { %671 = vst [vmem:[%s351_s30 + $0x14] sm:$0xf] %v883_v1  ;;  %v882_v4 = vpack.c.bf16 %v604_v2, %v602_v63 }
 0x214   : > { %670 = vst [vmem:[%s351_s30 + $0xc] sm:$0xff] %v882_v4 }
 0x215 PF: > { %s17_s23 = sadd.s32 1, %s999_s23   ;;  %s1186_s21 = smov %s995_s22 }
 0x216   : > { %p14_p5 = scmp.ge.s32.totalorder %s17_s23, 4   ;;  %s1187_s22 = smov %s1189_s24 }
 0x218   :  { %16 = sbr.rel (!%p14_p5) target bundleno = 2 (0x2), region = 85 }

// kernel: transformer_encoder_pallas.7
= control target key start
LH: loop header
LB: loop body
LE: loop exit
PB: predicated region body
PF: predicated region fallthrough
CT: control target
= control target key end

     0   :  { %s1298_s12 = smov 0   ;;  %s1300_s13 = smov 0   ;;  %s1469_s0 = inlined_call_operand.vmem [shape: bf16[2,16,384], index: 0, kind: input, shape index: {}, may-alias: {0,1,2}]   ;;  %s1470_s1 = inlined_call_operand.vmem [shape: bf16[2,16,384], index: 1, kind: input, shape index: {}, may-alias: {0,1,2}]   ;;  %s1471_s2 = inlined_call_operand.vmem [shape: bf16[2,16,384], index: 2, kind: input, shape index: {}, may-alias: {0,1,2}]   ;;  %s1472_s3 = inlined_call_operand.vmem [shape: bf16[2,16,128], index: 3, kind: output, shape index: {}]  }
   0x1   :  { %s1302_s14 = smov 0   ;;  %s1304_s15 = smov 0  }
   0x2   :  { %s1306_s16 = smov 0  }
   0x3 LB: > { %s25_s17 = sadd.s32 1, %s1267_s15  ;;  %p41_p1 = scmp.ne.s32.totalorder %s1259_s13, %s1255_s12  ;;  %s1271_s16 = sphi %s1306_s16, %s13_s16   ;;  %s1267_s15 = sphi %s1304_s15, %s1477_s15   ;;  %s1263_s14 = sphi %s1302_s14, %s1476_s14   ;;  %s1259_s13 = sphi %s1300_s13, %s1475_s13   ;;  %s1255_s12 = sphi %s1298_s12, %s1474_s12  }
   0x4   : > { %p27_p0 = scmp.ge.s32.totalorder %s25_s17, 2  ;;  %p42_p2 = scmp.eq.s32.totalorder %s1271_s16, 0 }
   0x5   : > { %s34_s20 = sadd.s32 1, %s1259_s13  ;;  %p1055_p5 = scmp.ge.s32.totalorder %s1271_s16, 2 }
   0x6   : > { %s1479_s17 = smov (%p27_p0, %s25_s17), 0  ;;  %p1329_p3 = por %p42_p2, %p41_p1 }
   0x7   : > { %s29_s19 = ssub.s32 %s1267_s15, %s1479_s17  ;;  %155 = sbr.rel (%p1055_p5) target bundleno = 30 (0x1e), region = 16 }
   0x8   : > { %p32_p4 = scmp.eq.s32.totalorder %s29_s19, 0 }
   0xa   : > { %s1337_s21 = scalar_select %p32_p4, %s1259_s13, %s34_s20  }
   0xc   : > { %158 = sbr.rel (!%p1329_p3) target bundleno = 18 (0x12), region = 20  ;;  %s160_s22 = sand.u32 (%p1329_p3), 1, %s1259_s13  }
   0xd   : > { %s1152_s23 = smul.u32 (%p1329_p3), 24, %s1267_s15  ;;  %s1056_s24 = sshll.u32 (%p1329_p3), %s160_s22, 3 }
   0xe   : > { %s162_s28 = scalar_lea.vmem (%p1329_p3), [#allocation2], %s1056_s24 }
   0xf   : > { %s166_s27 = scalar_lea.vmem (%p1329_p3), %s1469_s0, %s1152_s23 }
  0x10   : > { %v183_v0 = vld [vmem:[%s166_s27] sm:$0xf] (%p1329_p3)  ;;  %v185_v1 = vld [vmem:[%s166_s27 + $0xc] sm:$0xf] (%p1329_p3) }
  0x11   : > { %184 = vst [vmem:[%s162_s28] sm:$0xf] %v183_v0  ;;  %186 = vst [vmem:[%s162_s28 + $0x4] sm:$0xf] %v185_v1 }
  0x12 PF: > { %214 = sbr.rel (!%p1329_p3) target bundleno = 24 (0x18), region = 61  ;;  %s216_s29 = sand.u32 (%p1329_p3), 1, %s1259_s13  }
  0x13   : > { %s1059_s30 = smul.u32 (%p1329_p3), 24, %s1267_s15  ;;  %s1058_s4 = sshll.u32 (%p1329_p3), %s216_s29, 3 }
  0x14   : > { %s218_s8 = scalar_lea.vmem (%p1329_p3), [#allocation3], %s1058_s4 }
  0x15   : > { %s963_s7 = scalar_lea.vmem (%p1329_p3), %s1470_s1, %s1059_s30 }
  0x16   : > { %v1060_v2 = vld [vmem:[%s963_s7 + $0x4] sm:$0xf] (%p1329_p3)  ;;  %v1061_v3 = vld [vmem:[%s963_s7 + $0x10] sm:$0xf] (%p1329_p3) }
  0x17   : > { %241 = vst [vmem:[%s218_s8] sm:$0xf] %v1060_v2  ;;  %243 = vst [vmem:[%s218_s8 + $0x4] sm:$0xf] %v1061_v3 }
  0x18 PF: > { %271 = sbr.rel (!%p1329_p3) target bundleno = 30 (0x1e), region = 102  ;;  %s273_s9 = sand.u32 (%p1329_p3), 1, %s1259_s13  }
  0x19   : > { %s1063_s10 = smul.u32 (%p1329_p3), 24, %s1267_s15  ;;  %s1062_s11 = sshll.u32 (%p1329_p3), %s273_s9, 3 }
  0x1a   : > { %s275_s23 = scalar_lea.vmem (%p1329_p3), [#allocation4], %s1062_s11 }
  0x1b   : > { %s970_s22 = scalar_lea.vmem (%p1329_p3), %s1471_s2, %s1063_s10 }
  0x1c   : > { %v1064_v4 = vld [vmem:[%s970_s22 + $0x8] sm:$0xf] (%p1329_p3)  ;;  %v1065_v5 = vld [vmem:[%s970_s22 + $0x14] sm:$0xf] (%p1329_p3) }
  0x1d   : > { %298 = vst [vmem:[%s275_s23] sm:$0xf] %v1064_v4  ;;  %300 = vst [vmem:[%s275_s23 + $0x4] sm:$0xf] %v1065_v5 }
  0x1e PF: > { %p1066_p6 = scmp.ge.s32.totalorder %s1271_s16, 1  ;;  %p327_p7 = scmp.lt.s32.totalorder %s1271_s16, 3 }
  0x20   : > { %p328_p8 = pnand %p1066_p6, %p327_p7 }
  0x21   : > { %s334_s18 = sand.u32 (!%p328_p8), 1, %s1255_s12   ;;  %s1275_s26 = smov (!%p328_p8), 96  }
  0x22   : > { %331 = sbr.rel (%p328_p8) target bundleno = 1458 (0x5b2), region = 143  ;;  %s1365_s24 = sshll.u32 (!%p328_p8), %s334_s18, 3 }
  0x23   : > { %s343_s25 = scalar_lea.vmem (!%p328_p8), [#allocation3], %s1365_s24  ;;  %s336_s12 = scalar_lea.vmem (!%p328_p8), [#allocation2], %s1365_s24 }
  0x24   : > { %s1276_s27 = smov (!%p328_p8), 32   ;;  %s350_s28 = scalar_lea.vmem (!%p328_p8), [#allocation4], %s1365_s24 }
  0x25   : > { %s1277_s29 = smov (!%p328_p8), 64   ;;  %p384_p9 = scmp.lt.s32.totalorder (!%p328_p8), %s1263_s14, 1 }
  0x27   : > { %v1273_v6 = vmov 0.0   ;;  %vm1274_vm0 = vmmov 0   ;;  %vm409_vm1 = vcmask 261120   ;;  %v1198_v7 = vld [vmem:[%s343_s25] sm:$0xff]   ;;  %v1199_v9 = vld [vmem:[%s336_s12] sm:$0xff]   ;;  %vm457_vm2 = vcmask 130048  }
  0x28   : > { %1104 = vmatprep.subr.bf16.mxu0 %v1273_v6  ;;  %1106 = vmatprep.mubr.msk.bf16.mxu0 %vm1274_vm0, %v1273_v6  ;;  %v414_v8 = vsel %vm409_vm1, %v1198_v7, 0  ;;  %v1386_v26 = vld [vmem:[%s350_s28] sm:$0xff]   ;;  %s1481_s14 = smov (!%p384_p9, %s1263_s14), 1  ;;  %vm910_vm3 = vcmask 523264   ;;  %vm913_vm4 = vcmask 785408  }
  0x29   : > { %1110 = vmatprep.subr.bf16.mxu1 %v1273_v6  ;;  %1112 = vmatprep.mubr.msk.bf16.mxu1 %vm1274_vm0, %v1273_v6  ;;  %s1087_s30 = sshll.u32 %s1481_s14, 3 }
  0x2a   : > { %1105 = vmatpush3.bf16.xpose.msra.mxu0 %v414_v8  ;;  %1111 = vmatpush3.bf16.msra.mxu1 %v1386_v26  ;;  %s391_s6 = scalar_lea.vmem %s1472_s3, %s1087_s30 }
  0x2b   : > { %1122 = vmatprep.subr.bf16.mxu0 %v1273_v6  ;;  %1116 = vmatprep.subr.bf16.mxu1 %v1273_v6 }
  0x31   : > { %1107 = vmatmul.mubr.msk.bf16.vlgmr.msra.gmra.mxu0 %vm409_vm1, %v1199_v9 }
  0x32   : > { %1124 = vmatprep.mubr.msk.bf16.mxu0 %vm1274_vm0, %v1273_v6 }
  0xf1   : > { %v450_v10 = vpop.f32.mrf.mxu0 }
  0xf2   : > { %v458_v11 = vsel %vm457_vm2, %v450_v10, -inf }
  0xf3   : > { %459 = vmax.xlane.f32.xlu0 %v458_v11  ;;  %v1108_v12 = vpop.f32.mrf.mxu0 }
  0xf5   : > { %v453_v13 = vpop.f32.mrf.mxu0 }
  0xf6   : > { %v461_v14 = vsel %vm457_vm2, %v453_v13, -inf }
  0xf7   : > { %462 = vmax.xlane.f32.xlu0 %v461_v14  ;;  %v1109_v15 = vpop.f32.mrf.mxu0 }
 0x10d   : > { %534 = vrot.lane.b32.xlu0 %v1198_v7, %s1275_s26 }
 0x111   : > { %778 = vrot.lane.b32.xlu0 %v1198_v7, %s1276_s27 }
 0x17c   : > { %v460_v16 = vpop.xlane.xlu0 %459 }
 0x17d   : > { %v464_v17 = vsub.f32 %v450_v10, %v460_v16 }
 0x17f   : > { %v466_v18 = vmul.f32 1.442695, %v464_v17 }
 0x180   : > { %v463_v19 = vpop.xlane.xlu0 %462 }
 0x181   : > { %1201 = vpow2.f32 %v466_v18  ;;  %v465_v20 = vsub.f32 %v453_v13, %v463_v19 }
 0x183   : > { %v468_v21 = vmul.f32 1.442695, %v465_v20 }
 0x184   : > { %v535_v31 = vpop.permute.xlu0 %534 }
 0x185   : > { %1203 = vpow2.f32 %v468_v21  ;;  %v540_v35 = vsel %vm409_vm1, %v535_v31, 0 }
 0x188   : > { %v779_v39 = vpop.permute.xlu0 %778 }
 0x189   : > { %v784_v41 = vsel %vm409_vm1, %v779_v39, 0 }
 0x18e   : > { %v1202_v22 = vpop.eup %1201 }
 0x18f   : > { %v470_v23 = vsel %vm457_vm2, %v1202_v22, 0.0 }
 0x190   : > { %471 = vadd.xlane.f32.xlu1 %v470_v23 }
 0x192   : > { %v1204_v24 = vpop.eup %1203 }
 0x193   : > { %v473_v25 = vsel %vm457_vm2, %v1204_v24, 0.0 }
 0x194   : > { %474 = vadd.xlane.f32.xlu1 %v473_v25 }
 0x1a5   : > { %532 = vrot.lane.b32.xlu1 %v1199_v9, %s1275_s26 }
 0x1a9   : > { %656 = vrot.lane.b32.xlu1 %v1198_v7, %s1277_s29 }
 0x1ad   : > { %654 = vrot.lane.b32.xlu1 %v1199_v9, %s1277_s29 }
 0x1b1   : > { %776 = vrot.lane.b32.xlu1 %v1199_v9, %s1276_s27 }
 0x219   : > { %v472_v27 = vpop.xlane.xlu1 %471 }
 0x21a   : > { %1205 = vrcp.f32 %v472_v27 }
 0x21d   : > { %v475_v28 = vpop.xlane.xlu1 %474 }
 0x21e   : > { %1207 = vrcp.f32 %v475_v28 }
 0x221   : > { %v533_v34 = vpop.permute.xlu1 %532 }
 0x225   : > { %v657_v37 = vpop.permute.xlu1 %656 }
 0x226   : > { %v662_v38 = vsel %vm409_vm1, %v657_v37, 0 }
 0x227   : > { %v1206_v29 = vpop.eup %1205 }
 0x228   : > { %v478_v32 = vmul.f32 %v1206_v29, %v1202_v22 }
 0x229   : > { %v655_v40 = vpop.permute.xlu1 %654 }
 0x22b   : > { %v1208_v30 = vpop.eup %1207 }
 0x22c   : > { %v479_v33 = vmul.f32 %v1208_v30, %v1204_v24 }
 0x22d   : > { %v777_v42 = vpop.permute.xlu1 %776 }
 0x22e   : > { %v480_v36 = vpack.c.bf16 %v479_v33, %v478_v32 }
 0x230   : > { %1113 = vmatmul.mubr.msk.bf16.vlgmr.msra.gmra.mxu1 %vm457_vm2, %v480_v36 }
 0x231   : > { %1117 = vmatpush3.bf16.xpose.msra.mxu1 %v540_v35  ;;  %1118 = vmatprep.mubr.msk.bf16.mxu1 %vm1274_vm0, %v1273_v6 }
 0x232   : > { %1128 = vmatprep.subr.bf16.mxu1 %v1273_v6 }
 0x238   : > { %1119 = vmatmul.mubr.msk.bf16.vlgmr.msra.gmra.mxu1 %vm409_vm1, %v533_v34 }
 0x239   : > { %1129 = vmatpush3.bf16.xpose.msra.mxu1 %v662_v38  ;;  %1130 = vmatprep.mubr.msk.bf16.mxu1 %vm1274_vm0, %v1273_v6 }
 0x23a   : > { %1140 = vmatprep.subr.bf16.mxu1 %v1273_v6 }
 0x240   : > { %1131 = vmatmul.mubr.msk.bf16.vlgmr.msra.gmra.mxu1 %vm409_vm1, %v655_v40 }
 0x241   : > { %1141 = vmatpush3.bf16.xpose.msra.mxu1 %v784_v41  ;;  %1142 = vmatprep.mubr.msk.bf16.mxu1 %vm1274_vm0, %v1273_v6 }
 0x248   : > { %1143 = vmatmul.mubr.msk.bf16.vlgmr.msra.gmra.mxu1 %vm409_vm1, %v777_v42 }
 0x2f0   : > { %v1409_v43 = vpop.f32.mrf.mxu1 }
 0x2f2   : > { %v1114_v44 = vpop.f32.mrf.mxu1 }
 0x2f4   : > { %v1411_v45 = vpop.f32.mrf.mxu1 }
 0x2f5   : > { %v531_v46 = vpack.c.bf16 %v1411_v45, %v1409_v43 }
 0x2f6   : > { %v1115_v47 = vpop.f32.mrf.mxu1 }
 0x2f8   : > { %v576_v48 = vpop.f32.mrf.mxu1 }
 0x2f9   : > { %v583_v49 = vsel %vm457_vm2, %v576_v48, -inf }
 0x2fa   : > { %584 = vmax.xlane.f32.xlu0 %v583_v49  ;;  %v1120_v50 = vpop.f32.mrf.mxu1 }
 0x2fc   : > { %v579_v51 = vpop.f32.mrf.mxu1 }
 0x2fd   : > { %v586_v52 = vsel %vm457_vm2, %v579_v51, -inf }
 0x2fe   : > { %587 = vmax.xlane.f32.xlu1 %v586_v52  ;;  %v1121_v53 = vpop.f32.mrf.mxu1 }
 0x300   : > { %v698_v54 = vpop.f32.mrf.mxu1 }
 0x301   : > { %v705_v55 = vsel %vm457_vm2, %v698_v54, -inf }
 0x302   : > { %706 = vmax.xlane.f32.xlu0 %v705_v55  ;;  %v1132_v56 = vpop.f32.mrf.mxu1 }
 0x304   : > { %v701_v57 = vpop.f32.mrf.mxu1 }
 0x305   : > { %v708_v58 = vsel %vm457_vm2, %v701_v57, -inf }
 0x306   : > { %709 = vmax.xlane.f32.xlu0 %v708_v58  ;;  %v1133_v59 = vpop.f32.mrf.mxu1 }
 0x308   : > { %v820_v60 = vpop.f32.mrf.mxu1 }
 0x309   : > { %v827_v61 = vsel %vm457_vm2, %v820_v60, -inf }
 0x30a   : > { %828 = vmax.xlane.f32.xlu0 %v827_v61  ;;  %v1144_v62 = vpop.f32.mrf.mxu1 }
 0x30c   : > { %v823_v63 = vpop.f32.mrf.mxu1 }
 0x30d   : > { %v830_v0 = vsel %vm457_vm2, %v823_v63, -inf }
 0x30e   : > { %831 = vmax.xlane.f32.xlu1 %v830_v0  ;;  %v1145_v1 = vpop.f32.mrf.mxu1 }
 0x383   : > { %v585_v2 = vpop.xlane.xlu0 %584 }
 0x384   : > { %v589_v3 = vsub.f32 %v576_v48, %v585_v2 }
 0x386   : > { %v591_v4 = vmul.f32 1.442695, %v589_v3 }
 0x387   : > { %v588_v5 = vpop.xlane.xlu1 %587 }
 0x388   : > { %1209 = vpow2.f32 %v591_v4  ;;  %v590_v7 = vsub.f32 %v579_v51, %v588_v5 }
 0x38a   : > { %v593_v8 = vmul.f32 1.442695, %v590_v7 }
 0x38b   : > { %v707_v9 = vpop.xlane.xlu0 %706 }
 0x38c   : > { %1211 = vpow2.f32 %v593_v8  ;;  %v711_v10 = vsub.f32 %v698_v54, %v707_v9 }
 0x38e   : > { %v713_v11 = vmul.f32 1.442695, %v711_v10 }
 0x38f   : > { %v710_v12 = vpop.xlane.xlu0 %709 }
 0x390   : > { %1213 = vpow2.f32 %v713_v11  ;;  %v712_v13 = vsub.f32 %v701_v57, %v710_v12 }
 0x392   : > { %v715_v14 = vmul.f32 1.442695, %v712_v13 }
 0x393   : > { %v829_v15 = vpop.xlane.xlu0 %828 }
 0x394   : > { %1215 = vpow2.f32 %v715_v14  ;;  %v833_v16 = vsub.f32 %v820_v60, %v829_v15 }
 0x395   : > { %v1210_v17 = vpop.eup %1209 }
 0x396   : > { %v835_v18 = vmul.f32 1.442695, %v833_v16  ;;  %v595_v19 = vsel %vm457_vm2, %v1210_v17, 0.0 }
 0x397   : > { %596 = vadd.xlane.f32.xlu0 %v595_v19  ;;  %v832_v29 = vpop.xlane.xlu1 %831 }
 0x398   : > { %1217 = vpow2.f32 %v835_v18  ;;  %v834_v30 = vsub.f32 %v823_v63, %v832_v29 }
 0x399   : > { %v1212_v20 = vpop.eup %1211 }
 0x39a   : > { %v598_v21 = vsel %vm457_vm2, %v1212_v20, 0.0  ;;  %v837_v31 = vmul.f32 1.442695, %v834_v30 }
 0x39b   : > { %599 = vadd.xlane.f32.xlu1 %v598_v21 }
 0x39c   : > { %1219 = vpow2.f32 %v837_v31 }
 0x39d   : > { %v1214_v22 = vpop.eup %1213 }
 0x39e   : > { %v717_v23 = vsel %vm457_vm2, %v1214_v22, 0.0 }
 0x39f   : > { %718 = vadd.xlane.f32.xlu0 %v717_v23 }
 0x3a1   : > { %v1216_v24 = vpop.eup %1215 }
 0x3a2   : > { %v720_v25 = vsel %vm457_vm2, %v1216_v24, 0.0 }
 0x3a3   : > { %721 = vadd.xlane.f32.xlu1 %v720_v25 }
 0x3a5   : > { %v1218_v27 = vpop.eup %1217 }
 0x3a6   : > { %v839_v28 = vsel %vm457_vm2, %v1218_v27, 0.0 }
 0x3a7   : > { %840 = vadd.xlane.f32.xlu0 %v839_v28 }
 0x3a9   : > { %v1220_v32 = vpop.eup %1219 }
 0x3aa   : > { %v842_v33 = vsel %vm457_vm2, %v1220_v32, 0.0 }
 0x3b4   : > { %728 = vrot.lane.b32.xlu1 %v1386_v26, %s1277_s29 }
 0x3bd   : > { %606 = vrot.lane.b32.xlu0 %v1386_v26, %s1275_s26 }
 0x3d8   : > { %843 = vadd.xlane.f32.xlu1 %v842_v33 }
 0x3e9   : > { %850 = vrot.lane.b32.xlu1 %v1386_v26, %s1276_s27 }
 0x420   : > { %v597_v34 = vpop.xlane.xlu0 %596 }
 0x421   : > { %1221 = vrcp.f32 %v597_v34 }
 0x424   : > { %v600_v35 = vpop.xlane.xlu1 %599 }
 0x425   : > { %1223 = vrcp.f32 %v600_v35 }
 0x428   : > { %v719_v36 = vpop.xlane.xlu0 %718 }
 0x429   : > { %1225 = vrcp.f32 %v719_v36 }
 0x42c   : > { %v722_v37 = vpop.xlane.xlu1 %721 }
 0x42d   : > { %1227 = vrcp.f32 %v722_v37 }
 0x42e   : > { %v1222_v38 = vpop.eup %1221 }
 0x42f   : > { %v603_v41 = vmul.f32 %v1222_v38, %v1210_v17 }
 0x430   : > { %v841_v39 = vpop.xlane.xlu0 %840  ;;  %v729_v26 = vpop.permute.xlu1 %728 }
 0x431   : > { %1229 = vrcp.f32 %v841_v39 }
 0x432   : > { %v1224_v40 = vpop.eup %1223 }
 0x433   : > { %v604_v42 = vmul.f32 %v1224_v40, %v1212_v20 }
 0x434   : > { %v607_v44 = vpop.permute.xlu0 %606 }
 0x435   : > { %1123 = vmatpush3.bf16.msra.mxu0 %v607_v44  ;;  %v605_v47 = vpack.c.bf16 %v604_v42, %v603_v41 }
 0x436   : > { %1134 = vmatprep.subr.bf16.mxu0 %v1273_v6  ;;  %v1226_v48 = vpop.eup %1225 }
 0x437   : > { %v725_v50 = vmul.f32 %v1226_v48, %v1214_v22 }
 0x438   : > { %1125 = vmatmul.mubr.msk.bf16.vlgmr.msra.gmra.mxu0 %vm457_vm2, %v605_v47 }
 0x439   : > { %1135 = vmatpush3.bf16.msra.mxu0 %v729_v26  ;;  %1136 = vmatprep.mubr.msk.bf16.mxu0 %vm1274_vm0, %v1273_v6 }
 0x43a   : > { %v1228_v49 = vpop.eup %1227  ;;  %1146 = vmatprep.subr.bf16.mxu0 %v1273_v6 }
 0x43b   : > { %v726_v51 = vmul.f32 %v1228_v49, %v1216_v24 }
 0x43d   : > { %v727_v52 = vpack.c.bf16 %v726_v51, %v725_v50 }
 0x43e   : > { %v1230_v55 = vpop.eup %1229 }
 0x43f   : > { %v847_v57 = vmul.f32 %v1230_v55, %v1218_v27 }
 0x440   : > { %1137 = vmatmul.mubr.msk.bf16.vlgmr.msra.gmra.mxu0 %vm457_vm2, %v727_v52 }
 0x441   : > { %1148 = vmatprep.mubr.msk.bf16.mxu0 %vm1274_vm0, %v1273_v6 }
 0x461   : > { %v844_v53 = vpop.xlane.xlu1 %843 }
 0x462   : > { %1231 = vrcp.f32 %v844_v53 }
 0x465   : > { %v851_v54 = vpop.permute.xlu1 %850 }
 0x466   : > { %1147 = vmatpush3.bf16.msra.mxu0 %v851_v54 }
 0x46f   : > { %v1232_v56 = vpop.eup %1231 }
 0x470   : > { %v848_v58 = vmul.f32 %v1232_v56, %v1220_v32 }
 0x472   : > { %v849_v59 = vpack.c.bf16 %v848_v58, %v847_v57 }
 0x474   : > { %1149 = vmatmul.mubr.msk.bf16.vlgmr.msra.gmra.mxu0 %vm457_vm2, %v849_v59 }
 0x4f8   : > { %v646_v60 = vpop.f32.mrf.mxu0 }
 0x4fa   : > { %v1126_v61 = vpop.f32.mrf.mxu0 }
 0x4fc   : > { %v649_v62 = vpop.f32.mrf.mxu0 }
 0x4fd   : > { %v653_v63 = vpack.c.bf16 %v649_v62, %v646_v60 }
 0x4fe   : > { %v1127_v0 = vpop.f32.mrf.mxu0 }
 0x4ff   : > { %899 = vrot.lane.b32.xlu1 %v653_v63, %s1276_s27 }
 0x500   : > { %v768_v6 = vpop.f32.mrf.mxu0 }
 0x502   : > { %v1138_v1 = vpop.f32.mrf.mxu0 }
 0x504   : > { %v771_v2 = vpop.f32.mrf.mxu0 }
 0x505   : > { %v775_v3 = vpack.c.bf16 %v771_v2, %v768_v6 }
 0x506   : > { %v1139_v4 = vpop.f32.mrf.mxu0 }
 0x507   : > { %902 = vrot.lane.b32.xlu0 %v775_v3, %s1277_s29 }
 0x534   : > { %v890_v5 = vpop.f32.mrf.mxu0 }
 0x536   : > { %v1150_v7 = vpop.f32.mrf.mxu0 }
 0x538   : > { %v893_v8 = vpop.f32.mrf.mxu0 }
 0x539   : > { %v897_v9 = vpack.c.bf16 %v893_v8, %v890_v5 }
 0x53a   : > { %v1151_v10 = vpop.f32.mrf.mxu0 }
 0x53b   : > { %905 = vrot.lane.b32.xlu1 %v897_v9, %s1275_s26 }
 0x571   : > { %v900_v11 = vpop.permute.xlu1 %899 }
 0x572   : > { %v909_v13 = vsel %vm409_vm1, %v531_v46, %v900_v11 }
 0x579   : > { %v903_v12 = vpop.permute.xlu0 %902 }
 0x57a   : > { %v912_v14 = vsel %vm910_vm3, %v909_v13, %v903_v12 }
 0x5ad   : > { %v906_v15 = vpop.permute.xlu1 %905 }
 0x5ae   : > { %v915_v16 = vsel %vm913_vm4, %v912_v14, %v906_v15 }
 0x5af   : > { %v1083_v17 = vcombine.low %v915_v16, %v915_v16  ;;  %v1084_v18 = vcombine.high %v915_v16, %v915_v16 }
 0x5b1   : > { %923 = vst [vmem:[%s391_s6] sm:$0xf] %v1083_v17  ;;  %924 = vst [vmem:[%s391_s6 + $0x4] sm:$0xf] %v1084_v18 }
 0x5b2 PF: > { %s13_s16 = sadd.s32 1, %s1271_s16   ;;  %s1474_s12 = smov %s1259_s13 }
 0x5b3   : > { %p10_p10 = scmp.ge.s32.totalorder %s13_s16, 4   ;;  %s1475_s13 = smov %s1337_s21 }
 0x5b4   : > { %s1476_s14 = smov %s1267_s15  ;;  %s1477_s15 = smov %s1479_s17 }
 0x5b5   :  { %12 = sbr.rel (!%p10_p10) target bundleno = 3 (0x3), region = 206 }

// kernel: transformer_encoder_pallas.8
= control target key start
LH: loop header
LB: loop body
LE: loop exit
PB: predicated region body
PF: predicated region fallthrough
CT: control target
= control target key end

     0   :  { %s1816_s13 = smov 0   ;;  %s1818_s14 = smov 0   ;;  %s2167_s0 = inlined_call_operand.vmem [shape: bf16[2,16,128], index: 0, kind: input, shape index: {}]   ;;  %s2168_s1 = inlined_call_operand.vmem [shape: f32[2,16,128], index: 1, kind: input, shape index: {}]   ;;  %s2169_s2 = inlined_call_operand.vmem [shape: bf16[128,128], index: 2, kind: input, shape index: {}]   ;;  %s2170_s3 = inlined_call_operand.vmem [shape: f32[1,128], index: 3, kind: input, shape index: {}]   ;;  %s2171_s4 = inlined_call_operand.vmem [shape: f32[1,128], index: 4, kind: input, shape index: {}]   ;;  %s2172_s5 = inlined_call_operand.vmem [shape: f32[1,128], index: 5, kind: input, shape index: {}]   ;;  %s2173_s6 = inlined_call_operand.vmem [shape: bf16[128,512], index: 6, kind: input, shape index: {}]   ;;  %s2174_s7 = inlined_call_operand.vmem [shape: f32[1,512], index: 7, kind: input, shape index: {}]   ;;  %s2175_s8 = inlined_call_operand.vmem [shape: bf16[512,128], index: 8, kind: input, shape index: {}]   ;;  %s2176_s9 = inlined_call_operand.vmem [shape: f32[1,128], index: 9, kind: input, shape index: {}]   ;;  %s2177_s10 = inlined_call_operand.vmem [shape: f32[2,16,128], index: 10, kind: output, shape index: {}]  }
   0x1   :  { %s1820_s15 = smov 0  }
   0x2 LB: > { %s32_s16 = sadd.s32 1, %s1752_s14  ;;  %p1436_p0 = scmp.ge.s32.totalorder %s1756_s15, 1  ;;  %s1756_s15 = sphi %s1820_s15, %s20_s15   ;;  %s1752_s14 = sphi %s1818_s14, %s2179_s14   ;;  %s1748_s13 = sphi %s1816_s13, %s2178_s13  }
   0x3   : > { %p34_p1 = scmp.ge.s32.totalorder %s32_s16, 2  ;;  %p350_p2 = scmp.lt.s32.totalorder %s1756_s15, 3 }
   0x5   : > { %s2181_s16 = smov (%p34_p1, %s32_s16), 0  ;;  %p351_p3 = pnand %p1436_p0, %p350_p2 }
   0x6   : > { %p406_p4 = scmp.lt.s32.totalorder (!%p351_p3), %s1748_s13, 1 }
   0x7   : > { %354 = sbr.rel (%p351_p3) target bundleno = 997 (0x3e5), region = 60 }
   0xc   : > { %v1625_v0 = vld [vmem:[%s2169_s2 + $0x38] sm:$0xff]   ;;  %v1758_v1 = vmov 0.0   ;;  %v1626_v2 = vld [vmem:[%s2169_s2 + $0x30] sm:$0xff]   ;;  %vm1759_vm0 = vmmov 0   ;;  %s2183_s13 = smov (!%p406_p4, %s1748_s13), 1  ;;  %v1627_v3 = vld [vmem:[%s2169_s2 + $0x28] sm:$0xff]  }
   0xd   : > { %1578 = vmatprep.subr.bf16.mxu0 %v1758_v1  ;;  %1594 = vmatprep.mubr.msk.bf16.mxu0 %vm1759_vm0, %v1758_v1  ;;  %s1522_s23 = sshll.u32 %s2183_s13, 3  ;;  %v1628_v4 = vld [vmem:[%s2169_s2 + $0x20] sm:$0xff]   ;;  %v1629_v5 = vld [vmem:[%s2169_s2 + $0x18] sm:$0xff]   ;;  %v1630_v6 = vld [vmem:[%s2169_s2 + $0x10] sm:$0xff]   ;;  %s1523_s21 = sshll.u32 %s2183_s13, 4  ;;  %v1760_v55 = vmov 0  }
   0xe   : > { %1579 = vmatpush3.bf16.msra.mxu0 %v1625_v0  ;;  %s413_s26 = scalar_lea.vmem %s2167_s0, %s1522_s23  ;;  %v1631_v7 = vld [vmem:[%s2169_s2 + $0x8] sm:$0xff]   ;;  %v1632_v8 = vld [vmem:[%s2169_s2] sm:$0xff]   ;;  %s423_s24 = scalar_lea.vmem %s2168_s1, %s1523_s21  ;;  %848 = vmatprep.mubr.bf16.mxu1 %v1760_v55 }
   0xf   : > { %1580 = vmatprep.subr.bf16.mxu0 %v1758_v1  ;;  %v1633_v9 = vld [vmem:[%s413_s26] sm:$0xff]   ;;  %v557_v17 = vld [vmem:[%s423_s24 + $0x8] sm:$0xff]  ;;  %s433_s30 = scalar_lea.vmem %s2177_s10, %s1523_s21 }
  0x10   : > { %v1443_v10 = vld [vmem:[%s2170_s3] ss:$0 sm:$0xff]  ;;  %v1634_v21 = vld [vmem:[%s2173_s6 + $0xe4] ss:$16 sps:$4 sm:$0xff]   ;;  %v1636_v22 = vld [vmem:[%s2173_s6 + $0xe8] ss:$16 sps:$4 sm:$0xff]  }
  0x11   : > { %v556_v12 = vld [vmem:[%s423_s24] sm:$0xff]  ;;  %v1638_v23 = vld [vmem:[%s2173_s6 + $0xec] ss:$16 sps:$4 sm:$0xff]   ;;  %816 = vmatprep.subr.bf16.mxu1 %v1634_v21  ;;  %v1642_v35 = vld [vmem:[%s2173_s6 + $0xc8] ss:$16 sps:$4 sm:$0xff]  }
  0x12   : > { %1581 = vmatpush3.bf16.msra.mxu0 %v1626_v2  ;;  %v1639_v24 = vld [vmem:[%s2173_s6 + $0xe0] ss:$16 sps:$4 sm:$0xff]   ;;  %v1640_v33 = vld [vmem:[%s2173_s6 + $0xc4] ss:$16 sps:$4 sm:$0xff]   ;;  %v1644_v34 = vld [vmem:[%s2173_s6 + $0xcc] ss:$16 sps:$4 sm:$0xff]  }
  0x13   : > { %1582 = vmatprep.subr.bf16.mxu0 %v1758_v1  ;;  %817 = vmatpush1.bf16.msra.mxu1 %v1639_v24  ;;  %v1645_v36 = vld [vmem:[%s2173_s6 + $0xc0] ss:$16 sps:$4 sm:$0xff]   ;;  %v1646_v37 = vld [vmem:[%s2173_s6 + $0xa4] ss:$16 sps:$4 sm:$0xff]   ;;  %v1650_v38 = vld [vmem:[%s2173_s6 + $0xac] ss:$16 sps:$4 sm:$0xff]  }
  0x14   : > { %818 = vmatprep.subr.bf16.mxu1 %v1640_v33  ;;  %v1648_v39 = vld [vmem:[%s2173_s6 + $0xa8] ss:$16 sps:$4 sm:$0xff]   ;;  %v1651_v40 = vld [vmem:[%s2173_s6 + $0xa0] ss:$16 sps:$4 sm:$0xff]   ;;  %v1652_v41 = vld [vmem:[%s2173_s6 + $0x84] ss:$16 sps:$4 sm:$0xff]  }
  0x15   : > { %v1654_v42 = vld [vmem:[%s2173_s6 + $0x88] ss:$16 sps:$4 sm:$0xff]   ;;  %v1656_v43 = vld [vmem:[%s2173_s6 + $0x8c] ss:$16 sps:$4 sm:$0xff]   ;;  %v1657_v44 = vld [vmem:[%s2173_s6 + $0x80] ss:$16 sps:$4 sm:$0xff]  }
  0x16   : > { %1583 = vmatpush3.bf16.msra.mxu0 %v1627_v3  ;;  %v1658_v45 = vld [vmem:[%s2173_s6 + $0x64] ss:$16 sps:$4 sm:$0xff]   ;;  %v1662_v46 = vld [vmem:[%s2173_s6 + $0x6c] ss:$16 sps:$4 sm:$0xff]   ;;  %v1660_v47 = vld [vmem:[%s2173_s6 + $0x68] ss:$16 sps:$4 sm:$0xff]  }
  0x17   : > { %1584 = vmatprep.subr.bf16.mxu0 %v1758_v1  ;;  %819 = vmatpush1.bf16.msra.mxu1 %v1645_v36  ;;  %v1663_v48 = vld [vmem:[%s2173_s6 + $0x60] ss:$16 sps:$4 sm:$0xff]   ;;  %v1664_v49 = vld [vmem:[%s2173_s6 + $0x44] ss:$16 sps:$4 sm:$0xff]   ;;  %v1668_v50 = vld [vmem:[%s2173_s6 + $0x4c] ss:$16 sps:$4 sm:$0xff]  }
  0x18   : > { %820 = vmatprep.subr.bf16.mxu1 %v1646_v37  ;;  %v1666_v51 = vld [vmem:[%s2173_s6 + $0x48] ss:$16 sps:$4 sm:$0xff]   ;;  %v1669_v52 = vld [vmem:[%s2173_s6 + $0x40] ss:$16 sps:$4 sm:$0xff]   ;;  %v1670_v53 = vld [vmem:[%s2173_s6 + $0x24] ss:$16 sps:$4 sm:$0xff]  }
  0x19   : > { %v1674_v54 = vld [vmem:[%s2173_s6 + $0x2c] ss:$16 sps:$4 sm:$0xff]   ;;  %v1672_v56 = vld [vmem:[%s2173_s6 + $0x28] ss:$16 sps:$4 sm:$0xff]   ;;  %v1675_v57 = vld [vmem:[%s2173_s6 + $0x20] ss:$16 sps:$4 sm:$0xff]  }
  0x1a   : > { %1585 = vmatpush3.bf16.msra.mxu0 %v1628_v4  ;;  %v1676_v58 = vld [vmem:[%s2173_s6 + $0x4] ss:$16 sps:$4 sm:$0xff]   ;;  %v1680_v59 = vld [vmem:[%s2173_s6 + $0xc] ss:$16 sps:$4 sm:$0xff]   ;;  %v1678_v60 = vld [vmem:[%s2173_s6 + $0x8] ss:$16 sps:$4 sm:$0xff]  }
  0x1b   : > { %1586 = vmatprep.subr.bf16.mxu0 %v1758_v1  ;;  %821 = vmatpush1.bf16.msra.mxu1 %v1651_v40  ;;  %v1681_v61 = vld [vmem:[%s2173_s6] ss:$16 sps:$4 sm:$0xff]   ;;  %v1698_v33 = vld [vmem:[%s2175_s8 + $0x58] sm:$0xff]  }
  0x1c   : > { %822 = vmatprep.subr.bf16.mxu1 %v1652_v41  ;;  %v1686_v21 = vld [vmem:[%s2175_s8 + $0x70] sm:$0xff]   ;;  %v1701_v36 = vld [vmem:[%s2175_s8 + $0x98] sm:$0xff]   ;;  %v1706_v41 = vld [vmem:[%s2175_s8 + $0x48] sm:$0xff]  }
  0x1d   : > { %v1689_v24 = vld [vmem:[%s2175_s8 + $0xb0] sm:$0xff]  }
  0x1e   : > { %1587 = vmatpush3.bf16.msra.mxu0 %v1629_v5  ;;  %v1702_v37 = vld [vmem:[%s2175_s8 + $0x50] sm:$0xff]  }
  0x1f   : > { %1588 = vmatprep.subr.bf16.mxu0 %v1758_v1  ;;  %823 = vmatpush1.bf16.msra.mxu1 %v1657_v44  ;;  %v1705_v40 = vld [vmem:[%s2175_s8 + $0x90] sm:$0xff]   ;;  %v1709_v44 = vld [vmem:[%s2175_s8 + $0x88] sm:$0xff]  }
  0x20   : > { %824 = vmatprep.subr.bf16.mxu1 %v1658_v45  ;;  %v1710_v45 = vld [vmem:[%s2175_s8 + $0x40] sm:$0xff]  }
  0x22   : > { %1589 = vmatpush3.bf16.msra.mxu0 %v1630_v6  ;;  %v1453_v6 = vld [vmem:[%s2171_s4] ss:$0 sm:$0xff] }
  0x23   : > { %1590 = vmatprep.subr.bf16.mxu0 %v1758_v1  ;;  %825 = vmatpush1.bf16.msra.mxu1 %v1663_v48  ;;  %v1713_v48 = vld [vmem:[%s2175_s8 + $0x80] sm:$0xff]  }
  0x24   : > { %826 = vmatprep.subr.bf16.mxu1 %v1664_v49  ;;  %v636_v49 = vlaneseq }
  0x26   : > { %1591 = vmatpush3.bf16.msra.mxu0 %v1631_v7 }
  0x27   : > { %1592 = vmatprep.subr.bf16.mxu0 %v1758_v1  ;;  %827 = vmatpush1.bf16.msra.mxu1 %v1669_v52 }
  0x28   : > { %828 = vmatprep.subr.bf16.mxu1 %v1670_v53  ;;  %v634_v53 = vld [vmem:[%s2174_s7] sm:$0xf] }
  0x2a   : > { %1593 = vmatpush3.bf16.msra.mxu0 %v1632_v8 }
  0x2b   : > { %859 = vmatprep.subr.bf16.mxu0 %v1638_v23  ;;  %829 = vmatpush1.bf16.msra.mxu1 %v1675_v57  ;;  %v1688_v23 = vld [vmem:[%s2175_s8 + $0x30] sm:$0xff]  }
  0x2c   : > { %830 = vmatprep.subr.bf16.mxu1 %v1676_v58 }
  0x2d   : > { %1595 = vmatmul.mubr.bf16.vlgmr.msra.gmra.mxu0 %v1633_v9 }
  0x2e   : > { %860 = vmatpush1.bf16.msra.mxu0 %v1636_v22  ;;  %891 = vmatprep.mubr.bf16.mxu0 %v1760_v55  ;;  %v1687_v22 = vld [vmem:[%s2175_s8 + $0xf0] sm:$0xff]  }
  0x2f   : > { %861 = vmatprep.subr.bf16.mxu0 %v1644_v34  ;;  %831 = vmatpush1.bf16.msra.mxu1 %v1681_v61  ;;  %v1699_v34 = vld [vmem:[%s2175_s8 + $0xd8] sm:$0xff]  }
  0x32   : > { %862 = vmatpush1.bf16.msra.mxu0 %v1642_v35  ;;  %v1700_v35 = vld [vmem:[%s2175_s8 + $0x18] sm:$0xff]  }
  0x33   : > { %863 = vmatprep.subr.bf16.mxu0 %v1650_v38  ;;  %v1703_v38 = vld [vmem:[%s2175_s8 + $0xd0] sm:$0xff]  }
  0x36   : > { %864 = vmatpush1.bf16.msra.mxu0 %v1648_v39  ;;  %v1704_v39 = vld [vmem:[%s2175_s8 + $0x10] sm:$0xff]  }
  0x37   : > { %865 = vmatprep.subr.bf16.mxu0 %v1656_v43  ;;  %v1708_v43 = vld [vmem:[%s2175_s8 + $0x8] sm:$0xff]  }
  0x3a   : > { %866 = vmatpush1.bf16.msra.mxu0 %v1654_v42  ;;  %v1707_v42 = vld [vmem:[%s2175_s8 + $0xc8] sm:$0xff]  }
  0x3b   : > { %867 = vmatprep.subr.bf16.mxu0 %v1662_v46  ;;  %v1711_v46 = vld [vmem:[%s2175_s8 + $0xc0] sm:$0xff]  }
  0x3e   : > { %868 = vmatpush1.bf16.msra.mxu0 %v1660_v47  ;;  %v1712_v47 = vld [vmem:[%s2175_s8] sm:$0xff]  }
  0x3f   : > { %869 = vmatprep.subr.bf16.mxu0 %v1668_v50  ;;  %v637_v50 = vshrl.u32 %v636_v49, 7 }
  0x41   : > { %v646_v52 = vsub.s32 2, %v637_v50  ;;  %v650_v55 = vsub.s32 3, %v637_v50 }
  0x42   : > { %870 = vmatpush1.bf16.msra.mxu0 %v1666_v51  ;;  %v638_v51 = vsub.s32 0, %v637_v50 }
  0x43   : > { %871 = vmatprep.subr.bf16.mxu0 %v1674_v54  ;;  %v642_v54 = vsub.s32 1, %v637_v50  ;;  %v647_v57 = vrot.slane %v634_v53, %v646_v52 }
  0x45   : > { %v643_v58 = vrot.slane %v634_v53, %v642_v54 }
  0x46   : > { %872 = vmatpush1.bf16.msra.mxu0 %v1672_v56  ;;  %v639_v56 = vrot.slane %v634_v53, %v638_v51 }
  0x47   : > { %873 = vmatprep.subr.bf16.mxu0 %v1680_v59  ;;  %v651_v59 = vrot.slane %v634_v53, %v650_v55 }
  0x4a   : > { %874 = vmatpush1.bf16.msra.mxu0 %v1678_v60 }
  0xed   : > { %v549_v11 = vpop.f32.mrf.mxu0 }
  0xee   : > { %v550_v13 = vadd.f32 %v1443_v10, %v549_v11 }
  0xef   : > { %v1596_v14 = vpop.f32.mrf.mxu0 }
  0xf0   : > { %v1873_v15 = vadd.f32 %v556_v12, %v550_v13 }
  0xf1   : > { %v552_v16 = vpop.f32.mrf.mxu0 }
  0xf2   : > { %v553_v18 = vadd.f32 %v1443_v10, %v552_v16  ;;  %562 = vadd.xlane.f32.xlu0 %v1873_v15  ;;  %v1454_v10 = vld [vmem:[%s2172_s5] ss:$0 sm:$0xff]  ;;  %v1682_v16 = vld [vmem:[%s2175_s8 + $0x78] sm:$0xff]  }
  0xf3   : > { %v1597_v19 = vpop.f32.mrf.mxu0  ;;  %1534 = vmatprep.subr.bf16.mxu1 %v1682_v16 }
  0xf4   : > { %v1876_v20 = vadd.f32 %v557_v17, %v553_v18  ;;  %v1683_v17 = vld [vmem:[%s2175_s8 + $0xf8] sm:$0xff]  }
  0xf5   : > { %v1684_v18 = vld [vmem:[%s2175_s8 + $0x38] sm:$0xff]   ;;  %1556 = vmatprep.subr.bf16.mxu0 %v1683_v17 }
  0xf6   : > { %564 = vadd.xlane.f32.xlu0 %v1876_v20  ;;  %v1685_v19 = vld [vmem:[%s2175_s8 + $0xb8] sm:$0xff]  }
 0x17b   : > { %v563_v25 = vpop.xlane.xlu0 %562 }
 0x17c   : > { %v567_v26 = vmul.f32 0.0078125, %v563_v25  ;;  %v1690_v25 = vld [vmem:[%s2175_s8 + $0x68] sm:$0xff]  }
 0x17e   : > { %v1892_v27 = vsub.f32 %v1873_v15, %v567_v26  ;;  %v1691_v26 = vld [vmem:[%s2175_s8 + $0xe8] sm:$0xff]  }
 0x17f   : > { %v565_v28 = vpop.xlane.xlu0 %564 }
 0x180   : > { %v568_v29 = vmul.f32 0.0078125, %v565_v28  ;;  %v571_v30 = vmul.f32 %v1892_v27, %v1892_v27  ;;  %v1693_v28 = vld [vmem:[%s2175_s8 + $0xa8] sm:$0xff]  }
 0x182   : > { %v1897_v31 = vsub.f32 %v1876_v20, %v568_v29  ;;  %573 = vadd.xlane.f32.xlu1 %v571_v30  ;;  %v1694_v29 = vld [vmem:[%s2175_s8 + $0x60] sm:$0xff]  }
 0x183   : > { %v1695_v30 = vld [vmem:[%s2175_s8 + $0xe0] sm:$0xff]  }
 0x184   : > { %v572_v32 = vmul.f32 %v1897_v31, %v1897_v31 }
 0x186   : > { %575 = vadd.xlane.f32.xlu1 %v572_v32  ;;  %v1697_v32 = vld [vmem:[%s2175_s8 + $0xa0] sm:$0xff]  }
 0x20b   : > { %v574_v62 = vpop.xlane.xlu1 %573 }
 0x20c   : > { %v577_v63 = vmul.f32 0.0078125, %v574_v62 }
 0x20e   : > { %v579_v0 = vadd.f32 1e-05, %v577_v63 }
 0x20f   : > { %v576_v1 = vpop.xlane.xlu1 %575 }
 0x210   : > { %1714 = vrsqrt.f32 %v579_v0  ;;  %v578_v2 = vmul.f32 0.0078125, %v576_v1 }
 0x212   : > { %v580_v3 = vadd.f32 1e-05, %v578_v2 }
 0x214   : > { %1716 = vrsqrt.f32 %v580_v3 }
 0x21d   : > { %v1715_v4 = vpop.eup %1714 }
 0x21e   : > { %v583_v5 = vmul.f32 %v1715_v4, %v1892_v27  ;;  %v1692_v27 = vld [vmem:[%s2175_s8 + $0x28] sm:$0xff]  }
 0x220   : > { %v591_v9 = vmul.f32 %v1453_v6, %v583_v5 }
 0x221   : > { %v1717_v7 = vpop.eup %1716 }
 0x222   : > { %v584_v8 = vmul.f32 %v1717_v7, %v1897_v31  ;;  %v599_v12 = vadd.f32 %v1454_v10, %v591_v9  ;;  %v1696_v31 = vld [vmem:[%s2175_s8 + $0x20] sm:$0xff]  }
 0x224   : > { %v592_v11 = vmul.f32 %v1453_v6, %v584_v8 }
 0x226   : > { %v600_v13 = vadd.f32 %v1454_v10, %v592_v11 }
 0x228   : > { %v601_v14 = vpack.c.bf16 %v600_v13, %v599_v12 }
 0x22a   : > { %849 = vmatmul.mubr.bf16.vlgmr.msra.gmra.mxu1 %v601_v14  ;;  %892 = vmatmul.mubr.bf16.vlgmr.msra.gmra.mxu0 %v601_v14 }
 0x22b   : > { %1535 = vmatpush3.bf16.msra.mxu1 %v1684_v18  ;;  %1557 = vmatpush3.bf16.msra.mxu0 %v1685_v19 }
 0x22c   : > { %1536 = vmatprep.subr.bf16.mxu1 %v1686_v21  ;;  %1558 = vmatprep.subr.bf16.mxu0 %v1687_v22 }
 0x22f   : > { %1537 = vmatpush3.bf16.msra.mxu1 %v1688_v23  ;;  %1559 = vmatpush3.bf16.msra.mxu0 %v1689_v24 }
 0x230   : > { %1538 = vmatprep.subr.bf16.mxu1 %v1690_v25  ;;  %1560 = vmatprep.subr.bf16.mxu0 %v1691_v26 }
 0x233   : > { %1539 = vmatpush3.bf16.msra.mxu1 %v1692_v27  ;;  %1561 = vmatpush3.bf16.msra.mxu0 %v1693_v28 }
 0x234   : > { %1540 = vmatprep.subr.bf16.mxu1 %v1694_v29  ;;  %1562 = vmatprep.subr.bf16.mxu0 %v1695_v30 }
 0x237   : > { %1541 = vmatpush3.bf16.msra.mxu1 %v1696_v31  ;;  %1563 = vmatpush3.bf16.msra.mxu0 %v1697_v32 }
 0x238   : > { %1542 = vmatprep.subr.bf16.mxu1 %v1698_v33  ;;  %1564 = vmatprep.subr.bf16.mxu0 %v1699_v34 }
 0x23b   : > { %1543 = vmatpush3.bf16.msra.mxu1 %v1700_v35  ;;  %1565 = vmatpush3.bf16.msra.mxu0 %v1701_v36 }
 0x23c   : > { %1544 = vmatprep.subr.bf16.mxu1 %v1702_v37  ;;  %1566 = vmatprep.subr.bf16.mxu0 %v1703_v38 }
 0x23f   : > { %1545 = vmatpush3.bf16.msra.mxu1 %v1704_v39  ;;  %1567 = vmatpush3.bf16.msra.mxu0 %v1705_v40 }
 0x240   : > { %1546 = vmatprep.subr.bf16.mxu1 %v1706_v41  ;;  %1568 = vmatprep.subr.bf16.mxu0 %v1707_v42 }
 0x243   : > { %1547 = vmatpush3.bf16.msra.mxu1 %v1708_v43  ;;  %1569 = vmatpush3.bf16.msra.mxu0 %v1709_v44 }
 0x244   : > { %1548 = vmatprep.subr.bf16.mxu1 %v1710_v45  ;;  %1570 = vmatprep.subr.bf16.mxu0 %v1711_v46 }
 0x247   : > { %1549 = vmatpush3.bf16.msra.mxu1 %v1712_v47  ;;  %1571 = vmatpush3.bf16.msra.mxu0 %v1713_v48 }
 0x2ea   : > { %v850_v60 = vpop.f32.mrf.mxu1  ;;  %v893_v61 = vpop.f32.mrf.mxu0 }
 0x2eb   : > { %v2092_v62 = vadd.f32 %v850_v60, %v639_v56  ;;  %v2094_v63 = vadd.f32 %v893_v61, %v647_v57 }
 0x2ec   : > { %v852_v0 = vpop.f32.mrf.mxu1  ;;  %v895_v1 = vpop.f32.mrf.mxu0 }
 0x2ed   : > { %v902_v2 = vmul.f32 %v2092_v62, %v2092_v62  ;;  %v904_v3 = vmul.f32 %v2094_v63, %v2094_v63  ;;  %v2100_v4 = vadd.f32 %v852_v0, %v643_v58  ;;  %v2102_v5 = vadd.f32 %v895_v1, %v651_v59 }
 0x2ee   : > { %v854_v6 = vpop.f32.mrf.mxu1  ;;  %v897_v7 = vpop.f32.mrf.mxu0 }
 0x2ef   : > { %v910_v8 = vmul.f32 %v902_v2, %v2092_v62  ;;  %v912_v9 = vmul.f32 %v904_v3, %v2094_v63  ;;  %v903_v10 = vmul.f32 %v2100_v4, %v2100_v4  ;;  %v905_v11 = vmul.f32 %v2102_v5, %v2102_v5 }
 0x2f0   : > { %v2110_v12 = vadd.f32 %v854_v6, %v639_v56  ;;  %v2112_v13 = vadd.f32 %v897_v7, %v647_v57  ;;  %v856_v14 = vpop.f32.mrf.mxu1  ;;  %v899_v16 = vpop.f32.mrf.mxu0 }
 0x2f1   : > { %v918_v17 = vmul.f32 0.044715, %v910_v8  ;;  %v920_v18 = vmul.f32 0.044715, %v912_v9  ;;  %v911_v19 = vmul.f32 %v903_v10, %v2100_v4  ;;  %v913_v21 = vmul.f32 %v905_v11, %v2102_v5 }
 0x2f2   : > { %v906_v22 = vmul.f32 %v2110_v12, %v2110_v12  ;;  %v908_v23 = vmul.f32 %v2112_v13, %v2112_v13  ;;  %v2120_v24 = vadd.f32 %v856_v14, %v643_v58  ;;  %v2122_v25 = vadd.f32 %v899_v16, %v651_v59 }
 0x2f3   : > { %v926_v26 = vadd.f32 %v918_v17, %v2092_v62  ;;  %v928_v27 = vadd.f32 %v920_v18, %v2094_v63  ;;  %v919_v28 = vmul.f32 0.044715, %v911_v19  ;;  %v921_v29 = vmul.f32 0.044715, %v913_v21 }
 0x2f4   : > { %v914_v30 = vmul.f32 %v906_v22, %v2110_v12  ;;  %v916_v31 = vmul.f32 %v908_v23, %v2112_v13  ;;  %v907_v32 = vmul.f32 %v2120_v24, %v2120_v24  ;;  %v909_v33 = vmul.f32 %v2122_v25, %v2122_v25 }
 0x2f5   : > { %v934_v34 = vmul.f32 0.7978846, %v926_v26  ;;  %v936_v35 = vmul.f32 0.7978846, %v928_v27  ;;  %v927_v36 = vadd.f32 %v919_v28, %v2100_v4  ;;  %v929_v37 = vadd.f32 %v921_v29, %v2102_v5 }
 0x2f6   : > { %v922_v38 = vmul.f32 0.044715, %v914_v30  ;;  %v924_v39 = vmul.f32 0.044715, %v916_v31  ;;  %v915_v40 = vmul.f32 %v907_v32, %v2120_v24  ;;  %v917_v41 = vmul.f32 %v909_v33, %v2122_v25 }
 0x2f7   : > { %1718 = vtanh.f32 %v934_v34  ;;  %v935_v42 = vmul.f32 0.7978846, %v927_v36  ;;  %v937_v43 = vmul.f32 0.7978846, %v929_v37 }
 0x2f8   : > { %1720 = vtanh.f32 %v936_v35  ;;  %v930_v44 = vadd.f32 %v922_v38, %v2110_v12  ;;  %v932_v45 = vadd.f32 %v924_v39, %v2112_v13  ;;  %v923_v46 = vmul.f32 0.044715, %v915_v40 }
 0x2f9   : > { %1722 = vtanh.f32 %v935_v42  ;;  %v925_v47 = vmul.f32 0.044715, %v917_v41 }
 0x2fa   : > { %1724 = vtanh.f32 %v937_v43  ;;  %v938_v48 = vmul.f32 0.7978846, %v930_v44  ;;  %v940_v49 = vmul.f32 0.7978846, %v932_v45  ;;  %v931_v50 = vadd.f32 %v923_v46, %v2120_v24 }
 0x2fb   : > { %v933_v51 = vadd.f32 %v925_v47, %v2122_v25 }
 0x2fc   : > { %1726 = vtanh.f32 %v938_v48  ;;  %v939_v52 = vmul.f32 0.7978846, %v931_v50 }
 0x2fd   : > { %1728 = vtanh.f32 %v940_v49  ;;  %v941_v53 = vmul.f32 0.7978846, %v933_v51 }
 0x2fe   : > { %1730 = vtanh.f32 %v939_v52 }
 0x2ff   : > { %1732 = vtanh.f32 %v941_v53 }
 0x304   : > { %v1719_v54 = vpop.eup %1718 }
 0x305   : > { %v1721_v55 = vpop.eup %1720  ;;  %v950_v60 = vadd.f32 1.0, %v1719_v54 }
 0x306   : > { %v1723_v56 = vpop.eup %1722  ;;  %v952_v1 = vadd.f32 1.0, %v1721_v55 }
 0x307   : > { %v1725_v57 = vpop.eup %1724  ;;  %v951_v58 = vadd.f32 1.0, %v1723_v56  ;;  %v958_v11 = vmul.f32 0.5, %v950_v60 }
 0x308   : > { %v953_v61 = vadd.f32 1.0, %v1725_v57  ;;  %v960_v18 = vmul.f32 0.5, %v952_v1 }
 0x309   : > { %v1727_v59 = vpop.eup %1726  ;;  %v959_v10 = vmul.f32 0.5, %v951_v58  ;;  %v966_v28 = vmul.f32 %v958_v11, %v2092_v62  ;;  %v1487_v62 = vld [vmem:[%s2176_s9] ss:$0 sm:$0xff] }
 0x30a   : > { %v1729_v0 = vpop.eup %1728  ;;  %v954_v2 = vadd.f32 1.0, %v1727_v59  ;;  %v961_v17 = vmul.f32 0.5, %v953_v61  ;;  %v968_v31 = vmul.f32 %v960_v18, %v2094_v63 }
 0x30b   : > { %v1731_v3 = vpop.eup %1730  ;;  %v956_v6 = vadd.f32 1.0, %v1729_v0  ;;  %v967_v26 = vmul.f32 %v959_v10, %v2100_v4 }
 0x30c   : > { %v1733_v7 = vpop.eup %1732  ;;  %v962_v8 = vmul.f32 0.5, %v954_v2  ;;  %v955_v9 = vadd.f32 1.0, %v1731_v3  ;;  %v969_v29 = vmul.f32 %v961_v17, %v2102_v5 }
 0x30d   : > { %v964_v14 = vmul.f32 0.5, %v956_v6  ;;  %v957_v16 = vadd.f32 1.0, %v1733_v7 }
 0x30e   : > { %v963_v19 = vmul.f32 0.5, %v955_v9  ;;  %v970_v21 = vmul.f32 %v962_v8, %v2110_v12 }
 0x30f   : > { %v965_v22 = vmul.f32 0.5, %v957_v16  ;;  %v972_v23 = vmul.f32 %v964_v14, %v2112_v13 }
 0x310   : > { %v971_v27 = vmul.f32 %v963_v19, %v2120_v24  ;;  %v974_v34 = vpack.c.bf16 %v970_v21, %v966_v28 }
 0x311   : > { %v973_v30 = vmul.f32 %v965_v22, %v2122_v25  ;;  %v976_v12 = vpack.c.bf16 %v972_v23, %v968_v31 }
 0x312   : > { %v975_v32 = vpack.c.bf16 %v971_v27, %v967_v26 }
 0x313   : > { %v977_v33 = vpack.c.bf16 %v973_v30, %v969_v29 }
 0x314   : > { %1273 = vmatprep.mubr.bf16.mxu1 %v975_v32 }
 0x315   : > { %1314 = vmatprep.mubr.bf16.mxu0 %v977_v33  ;;  %1274 = vmatmul.mubr.bf16.vlgmr.msra.gmra.mxu1 %v974_v34 }
 0x316   : > { %1315 = vmatmul.mubr.bf16.vlgmr.msra.gmra.mxu0 %v976_v12 }
 0x3d5   : > { %v1550_v4 = vpop.f32.mrf.mxu1 }
 0x3d6   : > { %v1572_v13 = vpop.f32.mrf.mxu0 }
 0x3d7   : > { %v1551_v5 = vpop.f32.mrf.mxu1 }
 0x3d8   : > { %v1552_v24 = vadd.f32 %v1551_v5, %v1550_v4  ;;  %v1573_v25 = vpop.f32.mrf.mxu0 }
 0x3d9   : > { %v1553_v35 = vpop.f32.mrf.mxu1  ;;  %v1574_v36 = vadd.f32 %v1573_v25, %v1572_v13 }
 0x3da   : > { %v1276_v63 = vadd.f32 %v1552_v24, %v1487_v62  ;;  %v1575_v37 = vpop.f32.mrf.mxu0 }
 0x3db   : > { %v1554_v38 = vpop.f32.mrf.mxu1 }
 0x3dc   : > { %v1317_v39 = vadd.f32 %v1574_v36, %v1276_v63  ;;  %v1555_v40 = vadd.f32 %v1554_v38, %v1553_v35  ;;  %v1576_v41 = vpop.f32.mrf.mxu0 }
 0x3dd   : > { %v1577_v44 = vadd.f32 %v1576_v41, %v1575_v37 }
 0x3de   : > { %v1323_v42 = vadd.f32 %v1317_v39, %v1873_v15  ;;  %v1279_v43 = vadd.f32 %v1555_v40, %v1487_v62 }
 0x3e0   : > { %1325 = vst [vmem:[%s433_s30] sm:$0xff] %v1323_v42  ;;  %v1320_v45 = vadd.f32 %v1577_v44, %v1279_v43 }
 0x3e2   : > { %v1324_v46 = vadd.f32 %v1320_v45, %v1876_v20 }
 0x3e4   : > { %1326 = vst [vmem:[%s433_s30 + $0x8] sm:$0xff] %v1324_v46 }
 0x3e5 PF: > { %s20_s15 = sadd.s32 1, %s1756_s15   ;;  %s2178_s13 = smov %s1752_s14 }
 0x3e6   : > { %p17_p5 = scmp.ge.s32.totalorder %s20_s15, 4   ;;  %s2179_s14 = smov %s2181_s16 }
 0x3e8   :  { %19 = sbr.rel (!%p17_p5) target bundleno = 2 (0x2), region = 93 }

// kernel: transformer_encoder_pallas.11
= control target key start
LH: loop header
LB: loop body
LE: loop exit
PB: predicated region body
PF: predicated region fallthrough
CT: control target
= control target key end

     0   :  { %s2330_s0 = inlined_call_operand.vmem [shape: bf16[2,16,128], index: 0, kind: input, shape index: {}]   ;;  %s2331_s1 = inlined_call_operand.vmem [shape: f32[2,16,128], index: 1, kind: input, shape index: {}]   ;;  %s2332_s2 = inlined_call_operand.vmem [shape: bf16[128,128], index: 2, kind: input, shape index: {}]   ;;  %s2333_s3 = inlined_call_operand.vmem [shape: f32[1,128], index: 3, kind: input, shape index: {}]   ;;  %s2334_s4 = inlined_call_operand.vmem [shape: f32[1,128], index: 4, kind: input, shape index: {}]   ;;  %s2335_s5 = inlined_call_operand.vmem [shape: f32[1,128], index: 5, kind: input, shape index: {}]   ;;  %s2336_s6 = inlined_call_operand.vmem [shape: bf16[128,512], index: 6, kind: input, shape index: {}]   ;;  %s2337_s7 = inlined_call_operand.vmem [shape: f32[1,512], index: 7, kind: input, shape index: {}]   ;;  %s2338_s8 = inlined_call_operand.vmem [shape: bf16[512,128], index: 8, kind: input, shape index: {}]   ;;  %s2339_s9 = inlined_call_operand.vmem [shape: f32[1,128], index: 9, kind: input, shape index: {}]   ;;  %s2340_s10 = inlined_call_operand.hbm [shape: f32[2,16,128], index: 10, kind: output, shape index: {}]  }
   0x1   :  { %2342 = sst [smem:[#allocation6_spill]] %s2330_s0 }
   0x2   :  { %15 = vsyncpa [#allocation3], 0 }
   0x3   :  { %17 = vsyncpa [#allocation3 + $0x1], 0  ;;  %s1906_s13 = smov 0   ;;  %s1908_s14 = smov 0  }
   0x4   :  { %s1910_s15 = smov 0   ;;  %s1912_s16 = smov 0  }
   0x5   :  { %s1914_s17 = smov 0   ;;  %s1916_s18 = smov 0  }
   0x6 LB: > { %s1430_s19 = sadd.s32 4294967295, %s1843_s18   ;;  %s1431_s20 = sadd.s32 4294967294, %s1843_s18   ;;  %s1843_s18 = sphi %s1916_s18, %s23_s18   ;;  %s1839_s17 = sphi %s1914_s17, %s2352_s17   ;;  %s1835_s16 = sphi %s1912_s16, %s2351_s16   ;;  %s1831_s15 = sphi %s1910_s15, %s2350_s15   ;;  %s1827_s14 = sphi %s1908_s14, %s2349_s14   ;;  %s1823_s13 = sphi %s1906_s13, %s2348_s13  }
   0x7   : > { %s35_s21 = sadd.s32 1, %s1839_s17  ;;  %s268_s22 = sadd.s32 1, %s1831_s15 }
   0x8   : > { %p37_p0 = scmp.ge.s32.totalorder %s35_s21, 2  ;;  %p278_p1 = scmp.ne.s32.totalorder %s1831_s15, %s1827_s14 }
   0x9   : > { %p279_p2 = scmp.eq.s32.totalorder %s1430_s19, 1  ;;  %p284_p3 = scmp.ne.s32.totalorder %s1827_s14, %s1823_s13 }
   0xa   : > { %s2354_s21 = smov (%p37_p0, %s35_s21), 0  ;;  %p285_p5 = scmp.eq.s32.totalorder %s1431_s20, 1 }
   0xb   : > { %2343 = sst [smem:[#allocation5_spill]] %s2354_s21  ;;  %p1946_p4 = por %p279_p2, %p278_p1 }
   0xc   : > { %s263_s24 = ssub.s32 %s1839_s17, %s2354_s21  ;;  %p1434_p6 = scmp.ge.s32.totalorder %s1843_s18, 1 }
   0xd   : > { %p266_p7 = scmp.eq.s32.totalorder %s263_s24, 0  ;;  %p1953_p8 = por %p285_p5, %p284_p3 }
   0xe   : > { %p353_p9 = scmp.lt.s32.totalorder %s1843_s18, 3 }
   0xf   : > { %s1959_s26 = scalar_select %p266_p7, %s1831_s15, %s268_s22  }
  0x10   : > { %p354_p10 = pnand %p1434_p6, %p353_p9 }
  0x11   : > { %p405_p11 = scmp.lt.s32.totalorder (!%p354_p10), %s1835_s16, 1  ;;  %s2346_s0 = sld [smem:[#allocation6_spill]] (!%p354_p10) }
  0x12   : > { %357 = sbr.rel (%p354_p10) target bundleno = 1021 (0x3fd), region = 60  ;;  %s1524_s29 = sshll.u32 (!%p354_p10), %s1835_s16, 8 }
  0x13   : > { %s2283_s19 = scalar_lea.hbm (!%p354_p10), %s2340_s10, %s1524_s29 }
  0x17   : > { %v1658_v0 = vld [vmem:[%s2332_s2 + $0x38] sm:$0xff]   ;;  %v1845_v1 = vmov 0.0   ;;  %v1659_v2 = vld [vmem:[%s2332_s2 + $0x30] sm:$0xff]   ;;  %vm1846_vm0 = vmmov 0   ;;  %s406_s11 = scalar_select %p405_p11, %s1835_s16, 1  ;;  %v1660_v3 = vld [vmem:[%s2332_s2 + $0x28] sm:$0xff]  }
  0x18   : > { %1578 = vmatprep.subr.bf16.mxu0 %v1845_v1  ;;  %1594 = vmatprep.mubr.msk.bf16.mxu0 %vm1846_vm0, %v1845_v1  ;;  %v1661_v4 = vld [vmem:[%s2332_s2 + $0x20] sm:$0xff]   ;;  %v1662_v5 = vld [vmem:[%s2332_s2 + $0x18] sm:$0xff]   ;;  %v1663_v6 = vld [vmem:[%s2332_s2 + $0x10] sm:$0xff]   ;;  %v1847_v55 = vmov 0   ;;  %s1848_s16 = smov [#allocation2]  }
  0x19   : > { %1579 = vmatpush3.bf16.msra.mxu0 %v1658_v0  ;;  %s1522_s20 = sshll.u32 %s406_s11, 3  ;;  %v1664_v7 = vld [vmem:[%s2332_s2 + $0x8] sm:$0xff]   ;;  %v1665_v8 = vld [vmem:[%s2332_s2] sm:$0xff]   ;;  %s1523_s28 = sshll.u32 %s406_s11, 4  ;;  %838 = vmatprep.mubr.bf16.mxu1 %v1847_v55 }
  0x1a   : > { %1580 = vmatprep.subr.bf16.mxu0 %v1845_v1  ;;  %s412_s27 = scalar_lea.vmem %s2346_s0, %s1522_s20  ;;  %s422_s12 = scalar_lea.vmem %s2331_s1, %s1523_s28  ;;  %v1440_v10 = vld [vmem:[%s2333_s3] ss:$0 sm:$0xff]  ;;  %v1667_v21 = vld [vmem:[%s2336_s6 + $0xe4] ss:$16 sps:$4 sm:$0xff]   ;;  %v1669_v22 = vld [vmem:[%s2336_s6 + $0xe8] ss:$16 sps:$4 sm:$0xff]  }
  0x1b   : > { %v1666_v9 = vld [vmem:[%s412_s27] sm:$0xff]   ;;  %v547_v17 = vld [vmem:[%s422_s12 + $0x8] sm:$0xff]  ;;  %806 = vmatprep.subr.bf16.mxu1 %v1667_v21  ;;  %v1719_v21 = vld [vmem:[%s2338_s8 + $0x70] sm:$0xff]   ;;  %s401_s20 = sand.u32 1, %s1827_s14   ;;  %s1771_s0 = sshll.u32 %s1848_s16, 4  ;;  %s1772_s0 = int_to_ptr.vmem [resolvable:$false] %s1771_s0 }
  0x1c   : > { %v546_v12 = vld [vmem:[%s422_s12] sm:$0xff]  ;;  %v1671_v23 = vld [vmem:[%s2336_s6 + $0xec] ss:$16 sps:$4 sm:$0xff]   ;;  %v1675_v35 = vld [vmem:[%s2336_s6 + $0xc8] ss:$16 sps:$4 sm:$0xff]   ;;  %s1435_s21 = sshll.u32 %s401_s20, 4 }
  0x1d   : > { %1581 = vmatpush3.bf16.msra.mxu0 %v1659_v2  ;;  %v1672_v24 = vld [vmem:[%s2336_s6 + $0xe0] ss:$16 sps:$4 sm:$0xff]   ;;  %v1673_v33 = vld [vmem:[%s2336_s6 + $0xc4] ss:$16 sps:$4 sm:$0xff]   ;;  %v1677_v34 = vld [vmem:[%s2336_s6 + $0xcc] ss:$16 sps:$4 sm:$0xff]  }
  0x1e   : > { %1582 = vmatprep.subr.bf16.mxu0 %v1845_v1  ;;  %807 = vmatpush1.bf16.msra.mxu1 %v1672_v24  ;;  %v1678_v36 = vld [vmem:[%s2336_s6 + $0xc0] ss:$16 sps:$4 sm:$0xff]   ;;  %v1679_v37 = vld [vmem:[%s2336_s6 + $0xa4] ss:$16 sps:$4 sm:$0xff]   ;;  %v1683_v38 = vld [vmem:[%s2336_s6 + $0xac] ss:$16 sps:$4 sm:$0xff]  }
  0x1f   : > { %808 = vmatprep.subr.bf16.mxu1 %v1673_v33  ;;  %v1681_v39 = vld [vmem:[%s2336_s6 + $0xa8] ss:$16 sps:$4 sm:$0xff]   ;;  %v1684_v40 = vld [vmem:[%s2336_s6 + $0xa0] ss:$16 sps:$4 sm:$0xff]   ;;  %v1685_v41 = vld [vmem:[%s2336_s6 + $0x84] ss:$16 sps:$4 sm:$0xff]  }
  0x20   : > { %v1687_v42 = vld [vmem:[%s2336_s6 + $0x88] ss:$16 sps:$4 sm:$0xff]   ;;  %v1689_v43 = vld [vmem:[%s2336_s6 + $0x8c] ss:$16 sps:$4 sm:$0xff]   ;;  %v1690_v44 = vld [vmem:[%s2336_s6 + $0x80] ss:$16 sps:$4 sm:$0xff]  }
  0x21   : > { %1583 = vmatpush3.bf16.msra.mxu0 %v1660_v3  ;;  %v1691_v45 = vld [vmem:[%s2336_s6 + $0x64] ss:$16 sps:$4 sm:$0xff]   ;;  %v1695_v46 = vld [vmem:[%s2336_s6 + $0x6c] ss:$16 sps:$4 sm:$0xff]   ;;  %v1693_v47 = vld [vmem:[%s2336_s6 + $0x68] ss:$16 sps:$4 sm:$0xff]  }
  0x22   : > { %1584 = vmatprep.subr.bf16.mxu0 %v1845_v1  ;;  %809 = vmatpush1.bf16.msra.mxu1 %v1678_v36  ;;  %v1696_v48 = vld [vmem:[%s2336_s6 + $0x60] ss:$16 sps:$4 sm:$0xff]   ;;  %v1697_v49 = vld [vmem:[%s2336_s6 + $0x44] ss:$16 sps:$4 sm:$0xff]   ;;  %v1701_v50 = vld [vmem:[%s2336_s6 + $0x4c] ss:$16 sps:$4 sm:$0xff]  }
  0x23   : > { %810 = vmatprep.subr.bf16.mxu1 %v1679_v37  ;;  %v1699_v51 = vld [vmem:[%s2336_s6 + $0x48] ss:$16 sps:$4 sm:$0xff]   ;;  %v1702_v52 = vld [vmem:[%s2336_s6 + $0x40] ss:$16 sps:$4 sm:$0xff]   ;;  %v1703_v53 = vld [vmem:[%s2336_s6 + $0x24] ss:$16 sps:$4 sm:$0xff]  }
  0x24   : > { %v1707_v54 = vld [vmem:[%s2336_s6 + $0x2c] ss:$16 sps:$4 sm:$0xff]   ;;  %v1705_v56 = vld [vmem:[%s2336_s6 + $0x28] ss:$16 sps:$4 sm:$0xff]   ;;  %v1708_v57 = vld [vmem:[%s2336_s6 + $0x20] ss:$16 sps:$4 sm:$0xff]  }
  0x25   : > { %1585 = vmatpush3.bf16.msra.mxu0 %v1661_v4  ;;  %v1709_v58 = vld [vmem:[%s2336_s6 + $0x4] ss:$16 sps:$4 sm:$0xff]   ;;  %v1713_v59 = vld [vmem:[%s2336_s6 + $0xc] ss:$16 sps:$4 sm:$0xff]   ;;  %v1711_v60 = vld [vmem:[%s2336_s6 + $0x8] ss:$16 sps:$4 sm:$0xff]  }
  0x26   : > { %1586 = vmatprep.subr.bf16.mxu0 %v1845_v1  ;;  %811 = vmatpush1.bf16.msra.mxu1 %v1684_v40  ;;  %v1714_v61 = vld [vmem:[%s2336_s6] ss:$16 sps:$4 sm:$0xff]   ;;  %v1731_v33 = vld [vmem:[%s2338_s8 + $0x58] sm:$0xff]   ;;  %s403_s24 = scalar_lea.vmem [#allocation2], %s1435_s21  ;;  %s2285_s11 = scalar_lea.sflag [#allocation3], %s401_s20 }
  0x27   : > { %812 = vmatprep.subr.bf16.mxu1 %v1685_v41  ;;  %v1722_v24 = vld [vmem:[%s2338_s8 + $0xb0] sm:$0xff]   ;;  %v1734_v36 = vld [vmem:[%s2338_s8 + $0x98] sm:$0xff]   ;;  %v1739_v41 = vld [vmem:[%s2338_s8 + $0x48] sm:$0xff]   ;;  %s1333_s28 = sshll.u32 %s403_s24, 4  ;;  %s1773_s22 = scalar_lea.vmem %s1772_s0, 512  ;;  %s2277_s28 = int_to_ptr.vmem [resolvable:$true] %s1333_s28 }
  0x28   : > { %v1735_v37 = vld [vmem:[%s2338_s8 + $0x50] sm:$0xff]   ;;  %s1767_s27 = scalar_lea.vmem %s2277_s28, 256  ;;  %p1774_p1 = scmp.lt.s32.totalorder %s2277_s28, %s1772_s0 }
  0x29   : > { %1587 = vmatpush3.bf16.msra.mxu0 %v1662_v5  ;;  %v1738_v40 = vld [vmem:[%s2338_s8 + $0x90] sm:$0xff]   ;;  %p1768_p12 = scmp.ne.s32.totalorder %s2277_s28, %s1767_s27  ;;  %p1775_p2 = scmp.lt.s32.totalorder %s1773_s22, %s1767_s27 }
  0x2a   : > { %1588 = vmatprep.subr.bf16.mxu0 %v1845_v1  ;;  %813 = vmatpush1.bf16.msra.mxu1 %v1690_v44  ;;  %v1742_v44 = vld [vmem:[%s2338_s8 + $0x88] sm:$0xff]  }
  0x2b   : > { %814 = vmatprep.subr.bf16.mxu1 %v1691_v45  ;;  %v1743_v45 = vld [vmem:[%s2338_s8 + $0x40] sm:$0xff]   ;;  %p1769_p13 = pnand %p1768_p12, %p1946_p4  ;;  %p1776_p3 = por %p1775_p2, %p1774_p1 }
  0x2d   : > { %1589 = vmatpush3.bf16.msra.mxu0 %v1663_v6  ;;  %v1450_v6 = vld [vmem:[%s2334_s4] ss:$0 sm:$0xff]  ;;  %p1770_p0 = pneg %p1769_p13 }
  0x2e   : > { %1590 = vmatprep.subr.bf16.mxu0 %v1845_v1  ;;  %815 = vmatpush1.bf16.msra.mxu1 %v1696_v48  ;;  %v1746_v48 = vld [vmem:[%s2338_s8 + $0x80] sm:$0xff]  }
  0x2f   : > { %816 = vmatprep.subr.bf16.mxu1 %v1697_v49  ;;  %v626_v49 = vlaneseq  ;;  %p1777_p5 = pnand %p1776_p3, %p1770_p0 }
  0x31   : > { %1591 = vmatpush3.bf16.msra.mxu0 %v1664_v7 }
  0x32   : > { %1592 = vmatprep.subr.bf16.mxu0 %v1845_v1  ;;  %817 = vmatpush1.bf16.msra.mxu1 %v1702_v52 }
  0x33   : > { %818 = vmatprep.subr.bf16.mxu1 %v1703_v53  ;;  %v624_v53 = vld [vmem:[%s2337_s7] sm:$0xf] }
  0x35   : > { %1593 = vmatpush3.bf16.msra.mxu0 %v1665_v8 }
  0x36   : > { %849 = vmatprep.subr.bf16.mxu0 %v1671_v23  ;;  %819 = vmatpush1.bf16.msra.mxu1 %v1708_v57  ;;  %v1721_v23 = vld [vmem:[%s2338_s8 + $0x30] sm:$0xff]  }
  0x37   : > { %820 = vmatprep.subr.bf16.mxu1 %v1709_v58 }
  0x38   : > { %1595 = vmatmul.mubr.bf16.vlgmr.msra.gmra.mxu0 %v1666_v9 }
  0x39   : > { %850 = vmatpush1.bf16.msra.mxu0 %v1669_v22  ;;  %881 = vmatprep.mubr.bf16.mxu0 %v1847_v55  ;;  %v1720_v22 = vld [vmem:[%s2338_s8 + $0xf0] sm:$0xff]  }
  0x3a   : > { %851 = vmatprep.subr.bf16.mxu0 %v1677_v34  ;;  %821 = vmatpush1.bf16.msra.mxu1 %v1714_v61  ;;  %v1732_v34 = vld [vmem:[%s2338_s8 + $0xd8] sm:$0xff]  }
  0x3d   : > { %852 = vmatpush1.bf16.msra.mxu0 %v1675_v35  ;;  %v1733_v35 = vld [vmem:[%s2338_s8 + $0x18] sm:$0xff]  }
  0x3e   : > { %853 = vmatprep.subr.bf16.mxu0 %v1683_v38  ;;  %v1736_v38 = vld [vmem:[%s2338_s8 + $0xd0] sm:$0xff]  }
  0x41   : > { %854 = vmatpush1.bf16.msra.mxu0 %v1681_v39  ;;  %v1737_v39 = vld [vmem:[%s2338_s8 + $0x10] sm:$0xff]  }
  0x42   : > { %855 = vmatprep.subr.bf16.mxu0 %v1689_v43  ;;  %v1741_v43 = vld [vmem:[%s2338_s8 + $0x8] sm:$0xff]  }
  0x45   : > { %856 = vmatpush1.bf16.msra.mxu0 %v1687_v42  ;;  %v1740_v42 = vld [vmem:[%s2338_s8 + $0xc8] sm:$0xff]  }
  0x46   : > { %857 = vmatprep.subr.bf16.mxu0 %v1695_v46  ;;  %v1744_v46 = vld [vmem:[%s2338_s8 + $0xc0] sm:$0xff]  }
  0x49   : > { %858 = vmatpush1.bf16.msra.mxu0 %v1693_v47  ;;  %v1745_v47 = vld [vmem:[%s2338_s8] sm:$0xff]  }
  0x4a   : > { %859 = vmatprep.subr.bf16.mxu0 %v1701_v50  ;;  %v627_v50 = vshrl.u32 %v626_v49, 7 }
  0x4c   : > { %v636_v52 = vsub.s32 2, %v627_v50  ;;  %v640_v55 = vsub.s32 3, %v627_v50 }
  0x4d   : > { %860 = vmatpush1.bf16.msra.mxu0 %v1699_v51  ;;  %v628_v51 = vsub.s32 0, %v627_v50 }
  0x4e   : > { %861 = vmatprep.subr.bf16.mxu0 %v1707_v54  ;;  %v632_v54 = vsub.s32 1, %v627_v50  ;;  %v637_v57 = vrot.slane %v624_v53, %v636_v52 }
  0x50   : > { %v633_v58 = vrot.slane %v624_v53, %v632_v54 }
  0x51   : > { %862 = vmatpush1.bf16.msra.mxu0 %v1705_v56  ;;  %v629_v56 = vrot.slane %v624_v53, %v628_v51 }
  0x52   : > { %863 = vmatprep.subr.bf16.mxu0 %v1713_v59  ;;  %v641_v59 = vrot.slane %v624_v53, %v640_v55 }
  0x55   : > { %864 = vmatpush1.bf16.msra.mxu0 %v1711_v60 }
  0xf8   : > { %v539_v11 = vpop.f32.mrf.mxu0 }
  0xf9   : > { %v540_v13 = vadd.f32 %v1440_v10, %v539_v11 }
  0xfa   : > { %v1596_v14 = vpop.f32.mrf.mxu0 }
  0xfb   : > { %v1996_v15 = vadd.f32 %v546_v12, %v540_v13 }
  0xfc   : > { %v542_v16 = vpop.f32.mrf.mxu0 }
  0xfd   : > { %v543_v18 = vadd.f32 %v1440_v10, %v542_v16  ;;  %552 = vadd.xlane.f32.xlu0 %v1996_v15  ;;  %v1451_v10 = vld [vmem:[%s2335_s5] ss:$0 sm:$0xff]  ;;  %v1715_v16 = vld [vmem:[%s2338_s8 + $0x78] sm:$0xff]  }
  0xfe   : > { %v1597_v19 = vpop.f32.mrf.mxu0  ;;  %1534 = vmatprep.subr.bf16.mxu1 %v1715_v16 }
  0xff   : > { %v1999_v20 = vadd.f32 %v547_v17, %v543_v18  ;;  %v1716_v17 = vld [vmem:[%s2338_s8 + $0xf8] sm:$0xff]  }
 0x100   : > { %v1717_v18 = vld [vmem:[%s2338_s8 + $0x38] sm:$0xff]   ;;  %1556 = vmatprep.subr.bf16.mxu0 %v1716_v17 }
 0x101   : > { %554 = vadd.xlane.f32.xlu0 %v1999_v20  ;;  %v1718_v19 = vld [vmem:[%s2338_s8 + $0xb8] sm:$0xff]  }
 0x186   : > { %v553_v25 = vpop.xlane.xlu0 %552 }
 0x187   : > { %v557_v26 = vmul.f32 0.0078125, %v553_v25  ;;  %v1723_v25 = vld [vmem:[%s2338_s8 + $0x68] sm:$0xff]  }
 0x189   : > { %v2015_v27 = vsub.f32 %v1996_v15, %v557_v26  ;;  %v1724_v26 = vld [vmem:[%s2338_s8 + $0xe8] sm:$0xff]  }
 0x18a   : > { %v555_v28 = vpop.xlane.xlu0 %554 }
 0x18b   : > { %v558_v29 = vmul.f32 0.0078125, %v555_v28  ;;  %v561_v30 = vmul.f32 %v2015_v27, %v2015_v27  ;;  %v1726_v28 = vld [vmem:[%s2338_s8 + $0xa8] sm:$0xff]  }
 0x18d   : > { %v2020_v31 = vsub.f32 %v1999_v20, %v558_v29  ;;  %563 = vadd.xlane.f32.xlu1 %v561_v30  ;;  %v1727_v29 = vld [vmem:[%s2338_s8 + $0x60] sm:$0xff]  }
 0x18e   : > { %v1728_v30 = vld [vmem:[%s2338_s8 + $0xe0] sm:$0xff]  }
 0x18f   : > { %v562_v32 = vmul.f32 %v2020_v31, %v2020_v31 }
 0x191   : > { %565 = vadd.xlane.f32.xlu1 %v562_v32  ;;  %v1730_v32 = vld [vmem:[%s2338_s8 + $0xa0] sm:$0xff]  }
 0x216   : > { %v564_v62 = vpop.xlane.xlu1 %563 }
 0x217   : > { %v567_v63 = vmul.f32 0.0078125, %v564_v62 }
 0x219   : > { %v569_v0 = vadd.f32 1e-05, %v567_v63 }
 0x21a   : > { %v566_v1 = vpop.xlane.xlu1 %565 }
 0x21b   : > { %1747 = vrsqrt.f32 %v569_v0  ;;  %v568_v2 = vmul.f32 0.0078125, %v566_v1 }
 0x21d   : > { %v570_v3 = vadd.f32 1e-05, %v568_v2 }
 0x21f   : > { %1749 = vrsqrt.f32 %v570_v3 }
 0x228   : > { %v1748_v4 = vpop.eup %1747 }
 0x229   : > { %v573_v5 = vmul.f32 %v1748_v4, %v2015_v27  ;;  %v1725_v27 = vld [vmem:[%s2338_s8 + $0x28] sm:$0xff]  }
 0x22b   : > { %v581_v9 = vmul.f32 %v1450_v6, %v573_v5 }
 0x22c   : > { %v1750_v7 = vpop.eup %1749 }
 0x22d   : > { %v574_v8 = vmul.f32 %v1750_v7, %v2020_v31  ;;  %v589_v12 = vadd.f32 %v1451_v10, %v581_v9  ;;  %v1729_v31 = vld [vmem:[%s2338_s8 + $0x20] sm:$0xff]  }
 0x22f   : > { %v582_v11 = vmul.f32 %v1450_v6, %v574_v8 }
 0x231   : > { %v590_v13 = vadd.f32 %v1451_v10, %v582_v11 }
 0x233   : > { %v591_v14 = vpack.c.bf16 %v590_v13, %v589_v12 }
 0x235   : > { %839 = vmatmul.mubr.bf16.vlgmr.msra.gmra.mxu1 %v591_v14  ;;  %882 = vmatmul.mubr.bf16.vlgmr.msra.gmra.mxu0 %v591_v14 }
 0x236   : > { %1535 = vmatpush3.bf16.msra.mxu1 %v1717_v18  ;;  %1557 = vmatpush3.bf16.msra.mxu0 %v1718_v19 }
 0x237   : > { %1536 = vmatprep.subr.bf16.mxu1 %v1719_v21  ;;  %1558 = vmatprep.subr.bf16.mxu0 %v1720_v22 }
 0x23a   : > { %1537 = vmatpush3.bf16.msra.mxu1 %v1721_v23  ;;  %1559 = vmatpush3.bf16.msra.mxu0 %v1722_v24 }
 0x23b   : > { %1538 = vmatprep.subr.bf16.mxu1 %v1723_v25  ;;  %1560 = vmatprep.subr.bf16.mxu0 %v1724_v26 }
 0x23e   : > { %1539 = vmatpush3.bf16.msra.mxu1 %v1725_v27  ;;  %1561 = vmatpush3.bf16.msra.mxu0 %v1726_v28 }
 0x23f   : > { %1540 = vmatprep.subr.bf16.mxu1 %v1727_v29  ;;  %1562 = vmatprep.subr.bf16.mxu0 %v1728_v30 }
 0x242   : > { %1541 = vmatpush3.bf16.msra.mxu1 %v1729_v31  ;;  %1563 = vmatpush3.bf16.msra.mxu0 %v1730_v32 }
 0x243   : > { %1542 = vmatprep.subr.bf16.mxu1 %v1731_v33  ;;  %1564 = vmatprep.subr.bf16.mxu0 %v1732_v34 }
 0x246   : > { %1543 = vmatpush3.bf16.msra.mxu1 %v1733_v35  ;;  %1565 = vmatpush3.bf16.msra.mxu0 %v1734_v36 }
 0x247   : > { %1544 = vmatprep.subr.bf16.mxu1 %v1735_v37  ;;  %1566 = vmatprep.subr.bf16.mxu0 %v1736_v38 }
 0x24a   : > { %1545 = vmatpush3.bf16.msra.mxu1 %v1737_v39  ;;  %1567 = vmatpush3.bf16.msra.mxu0 %v1738_v40 }
 0x24b   : > { %1546 = vmatprep.subr.bf16.mxu1 %v1739_v41  ;;  %1568 = vmatprep.subr.bf16.mxu0 %v1740_v42 }
 0x24e   : > { %1547 = vmatpush3.bf16.msra.mxu1 %v1741_v43  ;;  %1569 = vmatpush3.bf16.msra.mxu0 %v1742_v44 }
 0x24f   : > { %1548 = vmatprep.subr.bf16.mxu1 %v1743_v45  ;;  %1570 = vmatprep.subr.bf16.mxu0 %v1744_v46 }
 0x252   : > { %1549 = vmatpush3.bf16.msra.mxu1 %v1745_v47  ;;  %1571 = vmatpush3.bf16.msra.mxu0 %v1746_v48 }
 0x2f5   : > { %v840_v60 = vpop.f32.mrf.mxu1  ;;  %v883_v61 = vpop.f32.mrf.mxu0 }
 0x2f6   : > { %v2215_v62 = vadd.f32 %v840_v60, %v629_v56  ;;  %v2217_v63 = vadd.f32 %v883_v61, %v637_v57 }
 0x2f7   : > { %v842_v0 = vpop.f32.mrf.mxu1  ;;  %v885_v1 = vpop.f32.mrf.mxu0 }
 0x2f8   : > { %v892_v2 = vmul.f32 %v2215_v62, %v2215_v62  ;;  %v894_v3 = vmul.f32 %v2217_v63, %v2217_v63  ;;  %v2223_v4 = vadd.f32 %v842_v0, %v633_v58  ;;  %v2225_v5 = vadd.f32 %v885_v1, %v641_v59 }
 0x2f9   : > { %v844_v6 = vpop.f32.mrf.mxu1  ;;  %v887_v7 = vpop.f32.mrf.mxu0 }
 0x2fa   : > { %v900_v8 = vmul.f32 %v892_v2, %v2215_v62  ;;  %v902_v9 = vmul.f32 %v894_v3, %v2217_v63  ;;  %v893_v10 = vmul.f32 %v2223_v4, %v2223_v4  ;;  %v895_v11 = vmul.f32 %v2225_v5, %v2225_v5 }
 0x2fb   : > { %v2233_v12 = vadd.f32 %v844_v6, %v629_v56  ;;  %v2235_v13 = vadd.f32 %v887_v7, %v637_v57  ;;  %v846_v14 = vpop.f32.mrf.mxu1  ;;  %v889_v16 = vpop.f32.mrf.mxu0 }
 0x2fc   : > { %v908_v17 = vmul.f32 0.044715, %v900_v8  ;;  %v910_v18 = vmul.f32 0.044715, %v902_v9  ;;  %v901_v19 = vmul.f32 %v893_v10, %v2223_v4  ;;  %v903_v21 = vmul.f32 %v895_v11, %v2225_v5 }
 0x2fd   : > { %v896_v22 = vmul.f32 %v2233_v12, %v2233_v12  ;;  %v898_v23 = vmul.f32 %v2235_v13, %v2235_v13  ;;  %v2243_v24 = vadd.f32 %v846_v14, %v633_v58  ;;  %v2245_v25 = vadd.f32 %v889_v16, %v641_v59 }
 0x2fe   : > { %v916_v26 = vadd.f32 %v908_v17, %v2215_v62  ;;  %v918_v27 = vadd.f32 %v910_v18, %v2217_v63  ;;  %v909_v28 = vmul.f32 0.044715, %v901_v19  ;;  %v911_v29 = vmul.f32 0.044715, %v903_v21 }
 0x2ff   : > { %v904_v30 = vmul.f32 %v896_v22, %v2233_v12  ;;  %v906_v31 = vmul.f32 %v898_v23, %v2235_v13  ;;  %v897_v32 = vmul.f32 %v2243_v24, %v2243_v24  ;;  %v899_v33 = vmul.f32 %v2245_v25, %v2245_v25 }
 0x300   : > { %v924_v34 = vmul.f32 0.7978846, %v916_v26  ;;  %v926_v35 = vmul.f32 0.7978846, %v918_v27  ;;  %v917_v36 = vadd.f32 %v909_v28, %v2223_v4  ;;  %v919_v37 = vadd.f32 %v911_v29, %v2225_v5 }
 0x301   : > { %v912_v38 = vmul.f32 0.044715, %v904_v30  ;;  %v914_v39 = vmul.f32 0.044715, %v906_v31  ;;  %v905_v40 = vmul.f32 %v897_v32, %v2243_v24  ;;  %v907_v41 = vmul.f32 %v899_v33, %v2245_v25 }
 0x302   : > { %1751 = vtanh.f32 %v924_v34  ;;  %v925_v42 = vmul.f32 0.7978846, %v917_v36  ;;  %v927_v43 = vmul.f32 0.7978846, %v919_v37 }
 0x303   : > { %1753 = vtanh.f32 %v926_v35  ;;  %v920_v44 = vadd.f32 %v912_v38, %v2233_v12  ;;  %v922_v45 = vadd.f32 %v914_v39, %v2235_v13  ;;  %v913_v46 = vmul.f32 0.044715, %v905_v40 }
 0x304   : > { %1755 = vtanh.f32 %v925_v42  ;;  %v915_v47 = vmul.f32 0.044715, %v907_v41 }
 0x305   : > { %1757 = vtanh.f32 %v927_v43  ;;  %v928_v48 = vmul.f32 0.7978846, %v920_v44  ;;  %v930_v49 = vmul.f32 0.7978846, %v922_v45  ;;  %v921_v50 = vadd.f32 %v913_v46, %v2243_v24 }
 0x306   : > { %v923_v51 = vadd.f32 %v915_v47, %v2245_v25 }
 0x307   : > { %1759 = vtanh.f32 %v928_v48  ;;  %v929_v52 = vmul.f32 0.7978846, %v921_v50 }
 0x308   : > { %1761 = vtanh.f32 %v930_v49  ;;  %v931_v53 = vmul.f32 0.7978846, %v923_v51 }
 0x309   : > { %1763 = vtanh.f32 %v929_v52 }
 0x30a   : > { %1765 = vtanh.f32 %v931_v53 }
 0x30f   : > { %v1752_v54 = vpop.eup %1751 }
 0x310   : > { %v1754_v55 = vpop.eup %1753  ;;  %v940_v60 = vadd.f32 1.0, %v1752_v54 }
 0x311   : > { %v1756_v56 = vpop.eup %1755  ;;  %v942_v1 = vadd.f32 1.0, %v1754_v55 }
 0x312   : > { %v1758_v57 = vpop.eup %1757  ;;  %v941_v58 = vadd.f32 1.0, %v1756_v56  ;;  %v948_v11 = vmul.f32 0.5, %v940_v60 }
 0x313   : > { %v943_v61 = vadd.f32 1.0, %v1758_v57  ;;  %v950_v18 = vmul.f32 0.5, %v942_v1 }
 0x314   : > { %v1760_v59 = vpop.eup %1759  ;;  %v949_v10 = vmul.f32 0.5, %v941_v58  ;;  %v956_v28 = vmul.f32 %v948_v11, %v2215_v62  ;;  %v1484_v62 = vld [vmem:[%s2339_s9] ss:$0 sm:$0xff] }
 0x315   : > { %v1762_v0 = vpop.eup %1761  ;;  %v944_v2 = vadd.f32 1.0, %v1760_v59  ;;  %v951_v17 = vmul.f32 0.5, %v943_v61  ;;  %v958_v31 = vmul.f32 %v950_v18, %v2217_v63 }
 0x316   : > { %v1764_v3 = vpop.eup %1763  ;;  %v946_v6 = vadd.f32 1.0, %v1762_v0  ;;  %v957_v26 = vmul.f32 %v949_v10, %v2223_v4 }
 0x317   : > { %v1766_v7 = vpop.eup %1765  ;;  %v952_v8 = vmul.f32 0.5, %v944_v2  ;;  %v945_v9 = vadd.f32 1.0, %v1764_v3  ;;  %v959_v29 = vmul.f32 %v951_v17, %v2225_v5 }
 0x318   : > { %v954_v14 = vmul.f32 0.5, %v946_v6  ;;  %v947_v16 = vadd.f32 1.0, %v1766_v7 }
 0x319   : > { %v953_v19 = vmul.f32 0.5, %v945_v9  ;;  %v960_v21 = vmul.f32 %v952_v8, %v2233_v12 }
 0x31a   : > { %v955_v22 = vmul.f32 0.5, %v947_v16  ;;  %v962_v23 = vmul.f32 %v954_v14, %v2235_v13 }
 0x31b   : > { %v961_v27 = vmul.f32 %v953_v19, %v2243_v24  ;;  %v964_v34 = vpack.c.bf16 %v960_v21, %v956_v28 }
 0x31c   : > { %v963_v30 = vmul.f32 %v955_v22, %v2245_v25  ;;  %v966_v12 = vpack.c.bf16 %v962_v23, %v958_v31 }
 0x31d   : > { %v965_v32 = vpack.c.bf16 %v961_v27, %v957_v26 }
 0x31e   : > { %v967_v33 = vpack.c.bf16 %v963_v30, %v959_v29 }
 0x31f   : > { %1263 = vmatprep.mubr.bf16.mxu1 %v965_v32 }
 0x320   : > { %1304 = vmatprep.mubr.bf16.mxu0 %v967_v33  ;;  %1264 = vmatmul.mubr.bf16.vlgmr.msra.gmra.mxu1 %v964_v34 }
 0x321   : > { %1305 = vmatmul.mubr.bf16.vlgmr.msra.gmra.mxu0 %v966_v12 }
 0x3e0   : > { %v1550_v4 = vpop.f32.mrf.mxu1 }
 0x3e1   : > { %v1572_v13 = vpop.f32.mrf.mxu0 }
 0x3e2   : > { %v1551_v24 = vpop.f32.mrf.mxu1 }
 0x3e3   : > { %v1552_v5 = vadd.f32 %v1551_v24, %v1550_v4  ;;  %v1573_v25 = vpop.f32.mrf.mxu0 }
 0x3e4   : > { %v1553_v63 = vpop.f32.mrf.mxu1  ;;  %v1574_v36 = vadd.f32 %v1573_v25, %v1572_v13 }
 0x3e5   : > { %v1266_v35 = vadd.f32 %v1552_v5, %v1484_v62  ;;  %v1575_v37 = vpop.f32.mrf.mxu0 }
 0x3e6   : > { %v1554_v38 = vpop.f32.mrf.mxu1 }
 0x3e7   : > { %v1307_v39 = vadd.f32 %v1574_v36, %v1266_v35  ;;  %v1555_v40 = vadd.f32 %v1554_v38, %v1553_v63  ;;  %v1576_v41 = vpop.f32.mrf.mxu0 }
 0x3e8   : > { %v1577_v44 = vadd.f32 %v1576_v41, %v1575_v37 }
 0x3e9   : > { %v1313_v42 = vadd.f32 %v1307_v39, %v1996_v15  ;;  %v1269_v43 = vadd.f32 %v1555_v40, %v1484_v62 }
 0x3eb   : > { %1315 = vst [vmem:[%s403_s24] sm:$0xff] %v1313_v42  ;;  %v1310_v45 = vadd.f32 %v1577_v44, %v1269_v43 }
 0x3ed   : > { %v1314_v46 = vadd.f32 %v1310_v45, %v1999_v20 }
 0x3ef   : > { %1316 = vst [vmem:[%s403_s24 + $0x8] sm:$0xff] %v1314_v46 }
 0x3f0   : > { %1780 = shalt.err (!%p1777_p5)
}
 0x3f1   : > { %s1781_s20 = scalar_lea.hbm %s2283_s19, 256  ;;  %s1785_s29 = scalar_lea.hbm %s2340_s10, 512 }
 0x3f2   : > { %p1782_p6 = scmp.ne.s32.totalorder %s2283_s19, %s1781_s20  ;;  %p1786_p10 = scmp.lt.s32.totalorder %s2283_s19, %s2340_s10 }
 0x3f3   : > { %p1787_p11 = scmp.lt.s32.totalorder %s1785_s29, %s1781_s20 }
 0x3f4   : > { %p1783_p7 = pnand %p1782_p6, %p1946_p4 }
 0x3f5   : > { %p1788_p12 = por %p1787_p11, %p1786_p10 }
 0x3f6   : > { %p1784_p9 = pneg %p1783_p7 }
 0x3f8   : > { %p1789_p13 = pnand %p1788_p12, %p1784_p9 }
 0x3fa   : > { %1792 = shalt.err (!%p1789_p13)
}
 0x3fb   : > { %s1849_s27 = smov 128   ;;  %s1850_s16 = smov 8  }
 0x3fc   : > { %1598 = dma.vmem_to_hbm [thread:$0]  (%p1946_p4), %s2277_s28, 256, %s2283_s19, %s2285_s11, %s1849_s27, %s1849_s27, %s1850_s16  }
 0x3fd PF: > { %p1604_p0 = scmp.ge.s32.totalorder %s1843_s18, 2  ;;  %s1348_s0 = sand.u32 1, %s1823_s13  }
 0x3fe   : > { %s1349_s22 = scalar_lea.sflag [#allocation3], %s1348_s0 }
 0x3ff   : > { %p1601_p1 = pnand %p1604_p0, %p1953_p8 }
 0x401   : > { %p1602_p2 = pneg %p1601_p1 }
 0x403   : > { %1818 = dma.done.wait (%p1602_p2), %s1349_s22, 256  }
 0x404   : > { %1820 = vsyncadd (%p1602_p2), %s1349_s22, 4294967040  ;;  %s23_s18 = sadd.s32 1, %s1843_s18   ;;  %s2347_s23 = sld [smem:[#allocation5_spill]] }
 0x405   : > { %p20_p3 = scmp.ge.s32.totalorder %s23_s18, 4   ;;  %s2348_s13 = smov %s1827_s14 }
 0x406   : > { %s2349_s14 = smov %s1831_s15  ;;  %s2350_s15 = smov %s1959_s26 }
 0x407   : > { %s2351_s16 = smov %s1839_s17  ;;  %22 = sbr.rel (!%p20_p3) target bundleno = 6 (0x6), region = 98 }
 0x40a   : > { %s2352_s17 = smov %s2347_s23 }
 0x40c   :  { %1354 = vsyncpa [#allocation3], 1 }
 0x40d   :  { %1356 = vsyncpa [#allocation3 + $0x1], 1 }

</bundles_post_ra>
